<compile_context>
chip_gen: v7x
topology: tpu7x:2x2x1
jax: 0.10.0
libtpu: 0.0.40
codegen_flags: <defaults>
</compile_context>

<pallas_src>
import functools

import jax
import jax.numpy as jnp
from jax.experimental import pallas as pl
from jax.experimental.pallas import tpu as pltpu


def attention_pool2d_kernel(
    x_ref,        # (1, HW, C)    f32   one batch element, channels-last
    pos0_ref,     # (1, C)        f32   positional embedding of the mean token
    posr_ref,     # (HW, C)       f32   positional embedding of spatial tokens
    wq_ref,       # (C, C)        f32   Wq^T, pre-scaled by head_dim**-0.5
    bq_ref,       # (1, C)        f32   bq, pre-scaled by head_dim**-0.5
    wkv_ref,      # (C, 2C)       bf16  [Wk^T | Wv^T]
    bkv_ref,      # (1, 2C)       f32   [bk | bv]
    hmask_ref,    # (C, NHP)      f32   one-hot head mask (padded head lanes)
    hmaskT_ref,   # (NHP, C)      f32   its transpose
    wc_ref,       # (C, C_out)    f32   c_proj weight (transposed)
    bc_ref,       # (1, C_out)    f32   c_proj bias
    out_ref,      # (1, 1, C_out) f32
):
    xb = x_ref[0]                                                   # (HW, C)
    C = xb.shape[-1]

    # Token 0 = spatial mean (+ its positional embedding); it is the only query
    # but also participates as a key/value token.
    q_in = jnp.mean(xb, axis=0, keepdims=True) + pos0_ref[...]      # (1, C)
    # Spatial tokens (+ positional embeddings) are keys/values only.
    kv_in = xb + posr_ref[...]                                      # (HW, C)

    # Query projection (scale already folded into Wq / bq in the wrapper).
    q = (jnp.dot(q_in, wq_ref[...], preferred_element_type=jnp.float32)
         + bq_ref[...])                                             # (1, C)

    # Fused K/V projection, shared bf16 weight, f32 accumulation.  The HW-row
    # matmul is the dominant MXU work; the 1-row matmul for the mean token is
    # negligible.
    kv0 = (jnp.dot(q_in.astype(wkv_ref.dtype), wkv_ref[...],
                   preferred_element_type=jnp.float32)
           + bkv_ref[...])                                          # (1, 2C)
    kv = (jnp.dot(kv_in.astype(wkv_ref.dtype), wkv_ref[...],
                  preferred_element_type=jnp.float32)
          + bkv_ref[...])                                           # (HW, 2C)
    k0, v0 = kv0[:, :C], kv0[:, C:]                                 # (1, C) each
    k, v = kv[:, :C], kv[:, C:]                                     # (HW, C) each

    # Per-head logits: segment-sum of q*k over each head's channel slice via a
    # 0/1 head-mask matmul.  Padded head columns are all-zero in hmask (logits
    # exactly 0) and all-zero rows in hmask^T, so they never contribute.
    hm = hmask_ref[...]
    s0 = jnp.dot(q * k0, hm, preferred_element_type=jnp.float32)    # (1, NHP)
    s = jnp.dot(q * k, hm, preferred_element_type=jnp.float32)      # (HW, NHP)

    # Numerically-stable softmax over the HW+1 tokens, per head.
    m = jnp.maximum(s0, jnp.max(s, axis=0, keepdims=True))          # (1, NHP)
    p0 = jnp.exp(s0 - m)                                            # (1, NHP)
    p = jnp.exp(s - m)                                              # (HW, NHP)
    inv = pl.reciprocal(p0 + jnp.sum(p, axis=0, keepdims=True),
                        approx=True)                                # (1, NHP)
    a0 = p0 * inv                                                   # (1, NHP)
    a = p * inv                                                     # (HW, NHP)

    # Broadcast per-head attention back to channels and reduce over tokens.
    w0 = jnp.dot(a0, hmaskT_ref[...], preferred_element_type=jnp.float32)  # (1, C)
    wr = jnp.dot(a, hmaskT_ref[...], preferred_element_type=jnp.float32)   # (HW, C)
    ctx = w0 * v0 + jnp.sum(wr * v, axis=0, keepdims=True)          # (1, C)

    # Output projection (c_proj).
    out_ref[0] = (jnp.dot(ctx, wc_ref[...], preferred_element_type=jnp.float32)
                  + bc_ref[...])


def attention_pool2d(x_nchw, params, num_heads):
    """x_nchw: (B, C, H, W) f32 (PyTorch NCHW). Returns (B, output_dim) f32."""
    B, C, H, W = x_nchw.shape
    HW = H * W
    assert C % num_heads == 0
    head_dim = C // num_heads
    scale = float(head_dim) ** -0.5
    C_out = params["wc_t"].shape[1]

    # ---- wrapper-side layout plumbing / parameter fusion (no in-kernel reshape)
    x = jnp.transpose(x_nchw, (0, 2, 3, 1)).reshape(B, HW, C)       # (B, HW, C)

    pos = params["pos"].astype(jnp.float32)                         # (HW+1, C)
    pos0, posr = pos[:1], pos[1:]

    # Fold the attention scale into the query projection.
    wq = params["wq_t"].astype(jnp.float32) * scale                 # (C, C)
    bq = (params["bq"].astype(jnp.float32) * scale)[None, :]        # (1, C)
    wkv = jnp.concatenate(
        [params["wk_t"], params["wv_t"]], axis=1).astype(jnp.bfloat16)  # (C, 2C)
    bkv = jnp.concatenate([params["bk"], params["bv"]])[None, :]    # (1, 2C)
    wc = params["wc_t"].astype(jnp.float32)                         # (C, C_out)
    bc = params["bc"][None, :].astype(jnp.float32)                  # (1, C_out)

    # One-hot head mask, head axis padded to a full 128-lane width so every
    # matmul in the kernel has lane-aligned shapes.
    NHP = max(128, ((num_heads + 127) // 128) * 128)
    head_id = jnp.arange(C) // head_dim
    hmask = (head_id[:, None] == jnp.arange(NHP)[None, :]).astype(jnp.float32)
    hmask_t = hmask.T

    args = (x, pos0, posr, wq, bq, wkv, bkv, hmask, hmask_t, wc, bc)

    def const_spec(a):
        zeros = (0,) * a.ndim
        return pl.BlockSpec(a.shape, lambda b, _z=zeros: _z)

    in_specs = [pl.BlockSpec((1, HW, C), lambda b: (b, 0, 0))]
    in_specs += [const_spec(a) for a in args[1:]]

    flops = B * (2 * C * C                        # query projection
                 + 2 * (HW + 1) * C * (2 * C)     # fused k/v projection
                 + 4 * (HW + 1) * C * NHP         # head-mask matmuls
                 + 2 * C * C_out)                 # output projection
    bytes_accessed = (4 * int(x.size) + 4 * B * C_out
                      + sum(int(a.size) * a.dtype.itemsize for a in args[1:]))

    out = pl.pallas_call(
        attention_pool2d_kernel,
        out_shape=jax.ShapeDtypeStruct((B, 1, C_out), jnp.float32),
        grid=(B,),
        in_specs=in_specs,
        out_specs=pl.BlockSpec((1, 1, C_out), lambda b: (b, 0, 0)),
        compiler_params=pltpu.CompilerParams(
            dimension_semantics=("parallel",),       # megacore batch split (v7x)
            vmem_limit_bytes=32 * 1024 * 1024),
        cost_estimate=pl.CostEstimate(
            flops=flops,
            transcendentals=B * (HW + 1) * num_heads,
            bytes_accessed=bytes_accessed),
    )(*args)

    return out.reshape(B, C_out)


def attention_pool2d_ref(x_nchw, params, num_heads):
    """Pure-JAX f32 reference mirroring the PyTorch forward."""
    B, C, H, W = x_nchw.shape
    HW = H * W
    hd = C // num_heads
    L = HW + 1
    x = jnp.transpose(x_nchw, (0, 2, 3, 1)).reshape(B, HW, C)
    tokens = jnp.concatenate([jnp.mean(x, axis=1, keepdims=True), x], axis=1)
    tokens = tokens + params["pos"][None]                            # (B, L, C)
    q = (tokens[:, :1] @ params["wq_t"] + params["bq"]) * (hd ** -0.5)
    k = tokens @ params["wk_t"] + params["bk"]
    v = tokens @ params["wv_t"] + params["bv"]
    qh = q.reshape(B, 1, num_heads, hd).transpose(0, 2, 1, 3)        # (B, nh, 1, hd)
    kh = k.reshape(B, L, num_heads, hd).transpose(0, 2, 1, 3)        # (B, nh, L, hd)
    vh = v.reshape(B, L, num_heads, hd).transpose(0, 2, 1, 3)
    s = jnp.einsum("bhqd,bhkd->bhqk", qh, kh)
    a = jax.nn.softmax(s, axis=-1)
    ctx = jnp.einsum("bhqk,bhkd->bhqd", a, vh)
    ctx = ctx.transpose(0, 2, 1, 3).reshape(B, C)
    return ctx @ params["wc_t"] + params["bc"]


if __name__ == "__main__":
    B, C, H, W = 2, 128, 8, 8
    num_heads = 4
    C_out = 128
    HW = H * W

    key = jax.random.PRNGKey(0)
    ks = jax.random.split(key, 10)
    x = jax.random.normal(ks[0], (B, C, H, W), jnp.float32)

    # Linear weights are stored pre-transposed as (C_in, C_out) for the kernel.
    params = dict(
        pos=jax.random.normal(ks[1], (HW + 1, C), jnp.float32) / C ** 0.5,
        wq_t=jax.random.normal(ks[2], (C, C), jnp.float32) * 0.05,
        bq=jax.random.normal(ks[3], (C,), jnp.float32) * 0.05,
        wk_t=jax.random.normal(ks[4], (C, C), jnp.float32) * 0.05,
        bk=jax.random.normal(ks[5], (C,), jnp.float32) * 0.05,
        wv_t=jax.random.normal(ks[6], (C, C), jnp.float32) * 0.05,
        bv=jax.random.normal(ks[7], (C,), jnp.float32) * 0.05,
        wc_t=jax.random.normal(ks[8], (C, C_out), jnp.float32) * 0.05,
        bc=jax.random.normal(ks[9], (C_out,), jnp.float32) * 0.05,
    )

    out = jax.block_until_ready(attention_pool2d(x, params, num_heads))
    ref = jax.block_until_ready(attention_pool2d_ref(x, params, num_heads))

    assert out.shape == (B, C_out), out.shape
    assert bool(jnp.all(jnp.isfinite(out)))
    err = float(jnp.max(jnp.abs(out - ref)))
    assert err < 5e-2, f"max abs error vs f32 reference: {err}"
    print("KERNEL_OK")
</pallas_src>

<mosaic_0001>
module attributes {stable_mosaic.version = 11 : i64} {
  func.func @attention_pool2d_kernel(%arg0: i32, %arg1: memref<1x64x128xf32, #tpu.memory_space<vmem>>, %arg2: memref<1x128xf32, #tpu.memory_space<vmem>>, %arg3: memref<64x128xf32, #tpu.memory_space<vmem>>, %arg4: memref<128x128xf32, #tpu.memory_space<vmem>>, %arg5: memref<1x128xf32, #tpu.memory_space<vmem>>, %arg6: memref<128x256xbf16, #tpu.memory_space<vmem>>, %arg7: memref<1x256xf32, #tpu.memory_space<vmem>>, %arg8: memref<128x128xf32, #tpu.memory_space<vmem>>, %arg9: memref<128x128xf32, #tpu.memory_space<vmem>>, %arg10: memref<128x128xf32, #tpu.memory_space<vmem>>, %arg11: memref<1x128xf32, #tpu.memory_space<vmem>>, %arg12: memref<1x1x128xf32, #tpu.memory_space<vmem>>) attributes {dimension_semantics = [#tpu.dimension_semantics<parallel>], iteration_bounds = array<i64: 2>, scalar_prefetch = 0 : i64, scratch_operands = 0 : i64, tpu.core_type = #tpu.core_type<tc>, window_params = [{transform_indices = @transform_0, window_bounds = array<i64: 1, 64, 128>}, {pipeline_mode = #tpu.pipeline_mode<synchronous>, transform_indices = @transform_1, window_bounds = array<i64: 1, 128>}, {pipeline_mode = #tpu.pipeline_mode<synchronous>, transform_indices = @transform_2, window_bounds = array<i64: 64, 128>}, {pipeline_mode = #tpu.pipeline_mode<synchronous>, transform_indices = @transform_3, window_bounds = array<i64: 128, 128>}, {pipeline_mode = #tpu.pipeline_mode<synchronous>, transform_indices = @transform_4, window_bounds = array<i64: 1, 128>}, {pipeline_mode = #tpu.pipeline_mode<synchronous>, transform_indices = @transform_5, window_bounds = array<i64: 128, 256>}, {pipeline_mode = #tpu.pipeline_mode<synchronous>, transform_indices = @transform_6, window_bounds = array<i64: 1, 256>}, {pipeline_mode = #tpu.pipeline_mode<synchronous>, transform_indices = @transform_7, window_bounds = array<i64: 128, 128>}, {pipeline_mode = #tpu.pipeline_mode<synchronous>, transform_indices = @transform_8, window_bounds = array<i64: 128, 128>}, {pipeline_mode = #tpu.pipeline_mode<synchronous>, transform_indices = @transform_9, window_bounds = array<i64: 128, 128>}, {pipeline_mode = #tpu.pipeline_mode<synchronous>, transform_indices = @transform_10, window_bounds = array<i64: 1, 128>}, {transform_indices = @transform_11, window_bounds = array<i64: 1, 1, 128>}]} {
    %c0 = arith.constant 0 : index
    %c0_0 = arith.constant 0 : index
    %c0_1 = arith.constant 0 : index
    %0 = vector.load %arg1[%c0, %c0_0, %c0_1] : memref<1x64x128xf32, #tpu.memory_space<vmem>>, vector<1x64x128xf32>
    %1 = vector.shape_cast %0 : vector<1x64x128xf32> to vector<64x128xf32>
    %cst = arith.constant dense<0.000000e+00> : vector<128xf32>
    %2 = vector.multi_reduction <add>, %1, %cst [0] : vector<64x128xf32> to vector<128xf32>
    %3 = vector.shape_cast %2 : vector<128xf32> to vector<1x128xf32>
    %cst_2 = arith.constant 6.400000e+01 : f32
    %4 = vector.broadcast %cst_2 : f32 to vector<1x128xf32>
    %5 = arith.divf %3, %4 : vector<1x128xf32>
    %c0_3 = arith.constant 0 : index
    %c0_4 = arith.constant 0 : index
    %6 = vector.load %arg2[%c0_3, %c0_4] : memref<1x128xf32, #tpu.memory_space<vmem>>, vector<1x128xf32>
    %7 = arith.addf %5, %6 : vector<1x128xf32>
    %c0_5 = arith.constant 0 : index
    %c0_6 = arith.constant 0 : index
    %8 = vector.load %arg3[%c0_5, %c0_6] : memref<64x128xf32, #tpu.memory_space<vmem>>, vector<64x128xf32>
    %9 = arith.addf %1, %8 : vector<64x128xf32>
    %c0_7 = arith.constant 0 : index
    %c0_8 = arith.constant 0 : index
    %10 = vector.load %arg4[%c0_7, %c0_8] : memref<128x128xf32, #tpu.memory_space<vmem>>, vector<128x128xf32>
    %cst_9 = arith.constant dense<0.000000e+00> : vector<1x128xf32>
    %11 = tpu.matmul %7, %10, %cst_9 {dimension_numbers = #tpu.dot_dimension_numbers<[1], [0], [0], [1], [0, 0, 1, 1], [], []>} : vector<1x128xf32>, vector<128x128xf32>, vector<1x128xf32> -> vector<1x128xf32>
    %c0_10 = arith.constant 0 : index
    %c0_11 = arith.constant 0 : index
    %12 = vector.load %arg5[%c0_10, %c0_11] : memref<1x128xf32, #tpu.memory_space<vmem>>, vector<1x128xf32>
    %13 = arith.addf %11, %12 : vector<1x128xf32>
    %14 = arith.truncf %7 : vector<1x128xf32> to vector<1x128xbf16>
    %c0_12 = arith.constant 0 : index
    %c0_13 = arith.constant 0 : index
    %15 = vector.load %arg6[%c0_12, %c0_13] : memref<128x256xbf16, #tpu.memory_space<vmem>>, vector<128x256xbf16>
    %cst_14 = arith.constant dense<0.000000e+00> : vector<1x256xf32>
    %16 = tpu.matmul %14, %15, %cst_14 {dimension_numbers = #tpu.dot_dimension_numbers<[1], [0], [0], [1], [0, 0, 1, 1], [], []>} : vector<1x128xbf16>, vector<128x256xbf16>, vector<1x256xf32> -> vector<1x256xf32>
    %c0_15 = arith.constant 0 : index
    %c0_16 = arith.constant 0 : index
    %17 = vector.load %arg7[%c0_15, %c0_16] : memref<1x256xf32, #tpu.memory_space<vmem>>, vector<1x256xf32>
    %18 = arith.addf %16, %17 : vector<1x256xf32>
    %19 = arith.truncf %9 : vector<64x128xf32> to vector<64x128xbf16>
    %c0_17 = arith.constant 0 : index
    %c0_18 = arith.constant 0 : index
    %20 = vector.load %arg6[%c0_17, %c0_18] : memref<128x256xbf16, #tpu.memory_space<vmem>>, vector<128x256xbf16>
    %cst_19 = arith.constant dense<0.000000e+00> : vector<64x256xf32>
    %21 = tpu.matmul %19, %20, %cst_19 {dimension_numbers = #tpu.dot_dimension_numbers<[1], [0], [0], [1], [0, 0, 1, 1], [], []>} : vector<64x128xbf16>, vector<128x256xbf16>, vector<64x256xf32> -> vector<64x256xf32>
    %c0_20 = arith.constant 0 : index
    %c0_21 = arith.constant 0 : index
    %22 = vector.load %arg7[%c0_20, %c0_21] : memref<1x256xf32, #tpu.memory_space<vmem>>, vector<1x256xf32>
    %23 = vector.broadcast %22 : vector<1x256xf32> to vector<64x256xf32>
    %24 = arith.addf %21, %23 : vector<64x256xf32>
    %25 = vector.extract_strided_slice %18 {offsets = [0, 0], sizes = [1, 128], strides = [1, 1]} : vector<1x256xf32> to vector<1x128xf32>
    %26 = vector.extract_strided_slice %18 {offsets = [0, 128], sizes = [1, 128], strides = [1, 1]} : vector<1x256xf32> to vector<1x128xf32>
    %27 = vector.extract_strided_slice %24 {offsets = [0, 0], sizes = [64, 128], strides = [1, 1]} : vector<64x256xf32> to vector<64x128xf32>
    %28 = vector.extract_strided_slice %24 {offsets = [0, 128], sizes = [64, 128], strides = [1, 1]} : vector<64x256xf32> to vector<64x128xf32>
    %c0_22 = arith.constant 0 : index
    %c0_23 = arith.constant 0 : index
    %29 = vector.load %arg8[%c0_22, %c0_23] : memref<128x128xf32, #tpu.memory_space<vmem>>, vector<128x128xf32>
    %30 = arith.mulf %13, %25 : vector<1x128xf32>
    %cst_24 = arith.constant dense<0.000000e+00> : vector<1x128xf32>
    %31 = tpu.matmul %30, %29, %cst_24 {dimension_numbers = #tpu.dot_dimension_numbers<[1], [0], [0], [1], [0, 0, 1, 1], [], []>} : vector<1x128xf32>, vector<128x128xf32>, vector<1x128xf32> -> vector<1x128xf32>
    %32 = vector.broadcast %13 : vector<1x128xf32> to vector<64x128xf32>
    %33 = arith.mulf %32, %27 : vector<64x128xf32>
    %cst_25 = arith.constant dense<0.000000e+00> : vector<64x128xf32>
    %34 = tpu.matmul %33, %29, %cst_25 {dimension_numbers = #tpu.dot_dimension_numbers<[1], [0], [0], [1], [0, 0, 1, 1], [], []>} : vector<64x128xf32>, vector<128x128xf32>, vector<64x128xf32> -> vector<64x128xf32>
    %cst_26 = arith.constant dense<0xFF800000> : vector<128xf32>
    %35 = vector.multi_reduction <maximumf>, %34, %cst_26 [0] : vector<64x128xf32> to vector<128xf32>
    %36 = vector.shape_cast %35 : vector<128xf32> to vector<1x128xf32>
    %37 = arith.maximumf %31, %36 : vector<1x128xf32>
    %38 = arith.subf %31, %37 : vector<1x128xf32>
    %39 = math.exp %38 : vector<1x128xf32>
    %40 = vector.broadcast %37 : vector<1x128xf32> to vector<64x128xf32>
    %41 = arith.subf %34, %40 : vector<64x128xf32>
    %42 = math.exp %41 : vector<64x128xf32>
    %cst_27 = arith.constant dense<0.000000e+00> : vector<128xf32>
    %43 = vector.multi_reduction <add>, %42, %cst_27 [0] : vector<64x128xf32> to vector<128xf32>
    %44 = vector.shape_cast %43 : vector<128xf32> to vector<1x128xf32>
    %45 = arith.addf %39, %44 : vector<1x128xf32>
    %46 = tpu.reciprocal %45 {approx = true} : vector<1x128xf32> -> vector<1x128xf32>
    %47 = arith.mulf %39, %46 : vector<1x128xf32>
    %48 = vector.broadcast %46 : vector<1x128xf32> to vector<64x128xf32>
    %49 = arith.mulf %42, %48 : vector<64x128xf32>
    %c0_28 = arith.constant 0 : index
    %c0_29 = arith.constant 0 : index
    %50 = vector.load %arg9[%c0_28, %c0_29] : memref<128x128xf32, #tpu.memory_space<vmem>>, vector<128x128xf32>
    %cst_30 = arith.constant dense<0.000000e+00> : vector<1x128xf32>
    %51 = tpu.matmul %47, %50, %cst_30 {dimension_numbers = #tpu.dot_dimension_numbers<[1], [0], [0], [1], [0, 0, 1, 1], [], []>} : vector<1x128xf32>, vector<128x128xf32>, vector<1x128xf32> -> vector<1x128xf32>
    %c0_31 = arith.constant 0 : index
    %c0_32 = arith.constant 0 : index
    %52 = vector.load %arg9[%c0_31, %c0_32] : memref<128x128xf32, #tpu.memory_space<vmem>>, vector<128x128xf32>
    %cst_33 = arith.constant dense<0.000000e+00> : vector<64x128xf32>
    %53 = tpu.matmul %49, %52, %cst_33 {dimension_numbers = #tpu.dot_dimension_numbers<[1], [0], [0], [1], [0, 0, 1, 1], [], []>} : vector<64x128xf32>, vector<128x128xf32>, vector<64x128xf32> -> vector<64x128xf32>
    %54 = arith.mulf %51, %26 : vector<1x128xf32>
    %55 = arith.mulf %53, %28 : vector<64x128xf32>
    %cst_34 = arith.constant dense<0.000000e+00> : vector<128xf32>
    %56 = vector.multi_reduction <add>, %55, %cst_34 [0] : vector<64x128xf32> to vector<128xf32>
    %57 = vector.shape_cast %56 : vector<128xf32> to vector<1x128xf32>
    %58 = arith.addf %54, %57 : vector<1x128xf32>
    %c0_35 = arith.constant 0 : index
    %c0_36 = arith.constant 0 : index
    %59 = vector.load %arg10[%c0_35, %c0_36] : memref<128x128xf32, #tpu.memory_space<vmem>>, vector<128x128xf32>
    %cst_37 = arith.constant dense<0.000000e+00> : vector<1x128xf32>
    %60 = tpu.matmul %58, %59, %cst_37 {dimension_numbers = #tpu.dot_dimension_numbers<[1], [0], [0], [1], [0, 0, 1, 1], [], []>} : vector<1x128xf32>, vector<128x128xf32>, vector<1x128xf32> -> vector<1x128xf32>
    %c0_38 = arith.constant 0 : index
    %c0_39 = arith.constant 0 : index
    %61 = vector.load %arg11[%c0_38, %c0_39] : memref<1x128xf32, #tpu.memory_space<vmem>>, vector<1x128xf32>
    %62 = arith.addf %60, %61 : vector<1x128xf32>
    %c0_40 = arith.constant 0 : index
    %c0_41 = arith.constant 0 : index
    %c0_42 = arith.constant 0 : index
    %63 = vector.load %arg12[%c0_40, %c0_41, %c0_42] : memref<1x1x128xf32, #tpu.memory_space<vmem>>, vector<1x1x128xf32>
    %64 = vector.shape_cast %63 : vector<1x1x128xf32> to vector<1x128xf32>
    %65 = vector.shape_cast %62 : vector<1x128xf32> to vector<1x1x128xf32>
    tpu.vector_store %arg12[%c0_40, %c0_41, %c0_42], %65 {strides = array<i32>} : memref<1x1x128xf32, #tpu.memory_space<vmem>>, vector<1x1x128xf32>,
    return
  }
  func.func @transform_0(%arg0: i32) -> (i32, i32, i32) {
    %c0_i32 = arith.constant 0 : i32
    %c0_i32_0 = arith.constant 0 : i32
    %c0_i32_1 = arith.constant 0 : i32
    return %arg0, %c0_i32, %c0_i32_0 : i32, i32, i32
  }
  func.func @transform_1(%arg0: i32) -> (i32, i32) {
    %c0_i32 = arith.constant 0 : i32
    %c0_i32_0 = arith.constant 0 : i32
    %c0_i32_1 = arith.constant 0 : i32
    return %c0_i32, %c0_i32_0 : i32, i32
  }
  func.func @transform_2(%arg0: i32) -> (i32, i32) {
    %c0_i32 = arith.constant 0 : i32
    %c0_i32_0 = arith.constant 0 : i32
    %c0_i32_1 = arith.constant 0 : i32
    return %c0_i32, %c0_i32_0 : i32, i32
  }
  func.func @transform_3(%arg0: i32) -> (i32, i32) {
    %c0_i32 = arith.constant 0 : i32
    %c0_i32_0 = arith.constant 0 : i32
    %c0_i32_1 = arith.constant 0 : i32
    return %c0_i32, %c0_i32_0 : i32, i32
  }
  func.func @transform_4(%arg0: i32) -> (i32, i32) {
    %c0_i32 = arith.constant 0 : i32
    %c0_i32_0 = arith.constant 0 : i32
    %c0_i32_1 = arith.constant 0 : i32
    return %c0_i32, %c0_i32_0 : i32, i32
  }
  func.func @transform_5(%arg0: i32) -> (i32, i32) {
    %c0_i32 = arith.constant 0 : i32
    %c0_i32_0 = arith.constant 0 : i32
    %c0_i32_1 = arith.constant 0 : i32
    return %c0_i32, %c0_i32_0 : i32, i32
  }
  func.func @transform_6(%arg0: i32) -> (i32, i32) {
    %c0_i32 = arith.constant 0 : i32
    %c0_i32_0 = arith.constant 0 : i32
    %c0_i32_1 = arith.constant 0 : i32
    return %c0_i32, %c0_i32_0 : i32, i32
  }
  func.func @transform_7(%arg0: i32) -> (i32, i32) {
    %c0_i32 = arith.constant 0 : i32
    %c0_i32_0 = arith.constant 0 : i32
    %c0_i32_1 = arith.constant 0 : i32
    return %c0_i32, %c0_i32_0 : i32, i32
  }
  func.func @transform_8(%arg0: i32) -> (i32, i32) {
    %c0_i32 = arith.constant 0 : i32
    %c0_i32_0 = arith.constant 0 : i32
    %c0_i32_1 = arith.constant 0 : i32
    return %c0_i32, %c0_i32_0 : i32, i32
  }
  func.func @transform_9(%arg0: i32) -> (i32, i32) {
    %c0_i32 = arith.constant 0 : i32
    %c0_i32_0 = arith.constant 0 : i32
    %c0_i32_1 = arith.constant 0 : i32
    return %c0_i32, %c0_i32_0 : i32, i32
  }
  func.func @transform_10(%arg0: i32) -> (i32, i32) {
    %c0_i32 = arith.constant 0 : i32
    %c0_i32_0 = arith.constant 0 : i32
    %c0_i32_1 = arith.constant 0 : i32
    return %c0_i32, %c0_i32_0 : i32, i32
  }
  func.func @transform_11(%arg0: i32) -> (i32, i32, i32) {
    %c0_i32 = arith.constant 0 : i32
    %c0_i32_0 = arith.constant 0 : i32
    %c0_i32_1 = arith.constant 0 : i32
    return %arg0, %c0_i32, %c0_i32_0 : i32, i32, i32
  }
}

</mosaic_0001>

<bundles_post_ra>
// kernel: tpu_custom_call.1
= control target key start
LH: loop header
LB: loop body
LE: loop exit
PB: predicated region body
PF: predicated region fallthrough
CT: control target
= control target key end

     0   :  { %s3178_s0 = inlined_call_operand.hbm [shape: f32[2,64,128], index: 0, kind: input, shape index: {}]   ;;  %s3179_s1 = inlined_call_operand.vmem [shape: f32[1,128], index: 1, kind: input, shape index: {}]   ;;  %s3180_s2 = inlined_call_operand.hbm [shape: f32[64,128], index: 2, kind: input, shape index: {}]   ;;  %s3181_s3 = inlined_call_operand.hbm [shape: f32[128,128], index: 3, kind: input, shape index: {}]   ;;  %s3182_s4 = inlined_call_operand.vmem [shape: f32[1,128], index: 4, kind: input, shape index: {}]   ;;  %s3183_s5 = inlined_call_operand.hbm [shape: bf16[128,256], index: 5, kind: input, shape index: {}]   ;;  %s3184_s6 = inlined_call_operand.vmem [shape: f32[1,256], index: 6, kind: input, shape index: {}]   ;;  %s3185_s7 = inlined_call_operand.hbm [shape: f32[128,128], index: 7, kind: input, shape index: {}]   ;;  %s3186_s8 = inlined_call_operand.hbm [shape: f32[128,128], index: 8, kind: input, shape index: {}]   ;;  %s3187_s9 = inlined_call_operand.hbm [shape: f32[128,128], index: 9, kind: input, shape index: {}]   ;;  %s3188_s10 = inlined_call_operand.vmem [shape: f32[1,128], index: 10, kind: input, shape index: {}]   ;;  %s3189_s11 = inlined_call_operand.hbm [shape: f32[2,1,128], index: 11, kind: output, shape index: {}]  }
   0x1   :  { %3195 = sst [smem:[#allocation20_spill]] %s3180_s2 }
   0x2   :  { %3196 = sst [smem:[#allocation21_spill]] %s3182_s4 }
   0x3   :  { %3197 = sst [smem:[#allocation22_spill]] %s3188_s10 }
   0x4   :  { %3198 = sst [smem:[#allocation23_spill]] %s3189_s11 }
   0x5   :  { %16 = vsyncpa [#allocation3], 0 }
   0x6   :  { %18 = vsyncpa [#allocation3 + $0x1], 0 }
   0x7   :  { %19 = vsyncpa [#allocation6], 0 }
   0x8   :  { %20 = vsyncpa [#allocation9], 0 }
   0x9   :  { %21 = vsyncpa [#allocation12], 0 }
   0xa   :  { %22 = vsyncpa [#allocation4], 0 }
   0xb   :  { %24 = vsyncpa [#allocation4 + $0x1], 0  ;;  %s2615_s17 = smov 0   ;;  %s2617_s18 = smov 0  }
   0xc   :  { %s2619_s19 = smov 0   ;;  %s2621_s20 = smov 0  }
   0xd LB: > { %s2541_s21 = smov [#allocation5]   ;;  %s2636_s23 = sadd.s32 4294967295, %s2539_s20   ;;  %s2539_s20 = sphi %s2621_s20, %s3226_s20   ;;  %s2535_s19 = sphi %s2619_s19, %s3225_s19   ;;  %s2531_s18 = sphi %s2617_s18, %s3224_s18   ;;  %s2527_s17 = sphi %s2615_s17, %s3223_s17  }
   0xe   : > { %s312_s22 = sshll.u32 %s2541_s21, 4  ;;  %p1563_p0 = scmp.ge.s32.totalorder %s2539_s20, 1  ;;  %s2641_s22 = int_to_ptr.vmem [resolvable:$true] %s312_s22 }
   0xf   : > { %p3191_p1 = scmp.eq.s32.totalorder %s2636_s23, 0  ;;  %p297_p2 = scmp.lt.s32.totalorder %s2539_s20, 3 }
  0x10   : > { %s2542_s25 = smov [#allocation8]   ;;  %s2543_s28 = smov [#allocation11]  }
  0x11   : > { %p2643_p3 = pnand %p1563_p0, %p297_p2  ;;  %s341_s26 = sshll.u32 %s2542_s25, 4  ;;  %s2656_s26 = int_to_ptr.vmem [resolvable:$true] %s341_s26 }
  0x12   : > { %s370_s29 = sshll.u32 %s2543_s28, 4  ;;  %s3201_s2 = sld [smem:[#allocation20_spill]]  ;;  %s2658_s29 = int_to_ptr.vmem [resolvable:$true] %s370_s29 }
  0x13   : > { %s3199_s24 = scalar_select %p2643_p3, 1, 0 }
  0x14   : > { %p2134_p5 = pneg %p2643_p3 }
  0x16   : > { %p2652_p6 = pnand %p2134_p5, %p3191_p1 }
  0x18   : > { %s2263_s13 = scalar_lea.hbm %s3201_s2, 1024  ;;  %p2668_p8 = pneg %p2652_p6 }
  0x19   : > { %p2264_p7 = scmp.ne.s32.totalorder %s3201_s2, %s2263_s13  ;;  %p2270_p11 = scmp.lt.u32.totalorder %s2263_s13, %s3201_s2 }
  0x1b   : > { %p2266_p9 = pnand %p2668_p8, %p2264_p7 }
  0x1d   : > { %p2267_p10 = pneg %p2266_p9 }
  0x1f   : > { %p2272_p12 = pnand %p2270_p11, %p2267_p10 }
  0x21   : > { %2275 = shalt.err (!%p2272_p12)
}
  0x22   : > { %s2276_s28 = scalar_lea.vmem %s2641_s22, 1024  ;;  %p2284_p5 = scmp.lt.s32.totalorder %s2641_s22, %s2641_s22 }
  0x23   : > { %p2277_p13 = scmp.ne.s32.totalorder %s2641_s22, %s2276_s28  ;;  %p2285_p4 = scmp.lt.s32.totalorder %s2276_s28, %s2276_s28 }
  0x25   : > { %p2279_p0 = pnand %p2277_p13, %p2668_p8  ;;  %p2286_p7 = por %p2285_p4, %p2284_p5 }
  0x27   : > { %p2280_p2 = pneg %p2279_p0 }
  0x29   : > { %p2287_p9 = pnand %p2286_p7, %p2280_p2 }
  0x2b   : > { %2290 = shalt.err (!%p2287_p9)
}
  0x2c   : > { %s3193_s30 = smov 128   ;;  %s2545_s12 = smov 8  }
  0x2d   : > { %2137 = dma.hbm_to_vmem [thread:$0]  (!%p2652_p6), %s3201_s2, 1024, %s2641_s22, [#allocation6], %s3193_s30, %s3193_s30, %s2545_s12  }
  0x2e   : > { %s2291_s25 = scalar_lea.hbm %s3183_s5, 2048 }
  0x2f   : > { %p2292_p4 = scmp.ne.s32.totalorder %s3183_s5, %s2291_s25  ;;  %p2298_p12 = scmp.lt.u32.totalorder %s2291_s25, %s3183_s5 }
  0x31   : > { %p2294_p10 = pnand %p2292_p4, %p2668_p8 }
  0x33   : > { %p2295_p11 = pneg %p2294_p10 }
  0x35   : > { %p2300_p13 = pnand %p2298_p12, %p2295_p11 }
  0x37   : > { %2303 = shalt.err (!%p2300_p13)
}
  0x38   : > { %s2304_s22 = scalar_lea.vmem %s2656_s26, 2048  ;;  %p2312_p7 = scmp.lt.s32.totalorder %s2656_s26, %s2656_s26 }
  0x39   : > { %p2305_p0 = scmp.ne.s32.totalorder %s2656_s26, %s2304_s22  ;;  %p2313_p9 = scmp.lt.s32.totalorder %s2304_s22, %s2304_s22 }
  0x3b   : > { %p2307_p2 = pnand %p2305_p0, %p2668_p8  ;;  %p2314_p4 = por %p2313_p9, %p2312_p7 }
  0x3d   : > { %p2308_p5 = pneg %p2307_p2 }
  0x3f   : > { %p2315_p10 = pnand %p2314_p4, %p2308_p5 }
  0x41   : > { %2318 = shalt.err (!%p2315_p10)
}
  0x42   : > { %2143 = dma.hbm_to_vmem [thread:$0]  (!%p2652_p6), %s3183_s5, 2048, %s2656_s26, [#allocation9], %s3193_s30, %s3193_s30, %s2545_s12  }
  0x43   : > { %s2319_s14 = scalar_lea.hbm %s3186_s8, 2048 }
  0x44   : > { %p2320_p11 = scmp.ne.s32.totalorder %s3186_s8, %s2319_s14  ;;  %p2326_p0 = scmp.lt.u32.totalorder %s2319_s14, %s3186_s8 }
  0x46   : > { %p2322_p12 = pnand %p2320_p11, %p2668_p8 }
  0x48   : > { %p2323_p13 = pneg %p2322_p12 }
  0x4a   : > { %p2328_p2 = pnand %p2326_p0, %p2323_p13 }
  0x4c   : > { %2331 = shalt.err (!%p2328_p2)
}
  0x4d   : > { %s2332_s26 = scalar_lea.vmem %s2658_s29, 2048  ;;  %p2340_p4 = scmp.lt.s32.totalorder %s2658_s29, %s2658_s29 }
  0x4e   : > { %p2333_p5 = scmp.ne.s32.totalorder %s2658_s29, %s2332_s26  ;;  %p2341_p10 = scmp.lt.s32.totalorder %s2332_s26, %s2332_s26 }
  0x50   : > { %p2335_p7 = pnand %p2333_p5, %p2668_p8  ;;  %p2342_p11 = por %p2341_p10, %p2340_p4 }
  0x52   : > { %p2336_p9 = pneg %p2335_p7 }
  0x54   : > { %p2343_p12 = pnand %p2342_p11, %p2336_p9 }
  0x56   : > { %2346 = shalt.err (!%p2343_p12)
}
  0x57   : > { %2149 = dma.hbm_to_vmem [thread:$0]  (!%p2652_p6), %s3186_s8, 2048, %s2658_s29, [#allocation12], %s3193_s30, %s3193_s30, %s2545_s12  }
  0x58   : > { %s2546_s10 = smov [#allocation7]   ;;  %s2547_s13 = smov [#allocation10]  }
  0x59   : > { %s325_s11 = sshll.u32 %s2546_s10, 4  ;;  %s357_s14 = sshll.u32 %s2547_s13, 4  ;;  %s326_s11 = int_to_ptr.vmem [resolvable:$true] %s325_s11  ;;  %s358_s14 = int_to_ptr.vmem [resolvable:$true] %s357_s14 }
  0x5a   : > { %s2347_s25 = scalar_lea.hbm %s3181_s3, 2048 }
  0x5b   : > { %p2348_p13 = scmp.ne.s32.totalorder %s3181_s3, %s2347_s25  ;;  %p2354_p5 = scmp.lt.u32.totalorder %s2347_s25, %s3181_s3 }
  0x5d   : > { %p2350_p0 = pnand %p2348_p13, %p2668_p8 }
  0x5f   : > { %p2351_p2 = pneg %p2350_p0 }
  0x61   : > { %p2356_p7 = pnand %p2354_p5, %p2351_p2 }
  0x63   : > { %2359 = shalt.err (!%p2356_p7)
}
  0x64   : > { %s2360_s29 = scalar_lea.vmem %s326_s11, 2048  ;;  %p2368_p11 = scmp.lt.s32.totalorder %s326_s11, %s326_s11 }
  0x65   : > { %p2361_p9 = scmp.ne.s32.totalorder %s326_s11, %s2360_s29  ;;  %p2369_p12 = scmp.lt.s32.totalorder %s2360_s29, %s2360_s29 }
  0x67   : > { %p2363_p4 = pnand %p2361_p9, %p2668_p8  ;;  %p2370_p1 = por %p2369_p12, %p2368_p11 }
  0x69   : > { %p2364_p10 = pneg %p2363_p4 }
  0x6b   : > { %p2371_p3 = pnand %p2370_p1, %p2364_p10 }
  0x6d   : > { %2374 = shalt.err (!%p2371_p3)
}
  0x6e   : > { %2140 = dma.hbm_to_vmem [thread:$0]  (!%p2652_p6), %s3181_s3, 2048, %s326_s11, [#allocation6], %s3193_s30, %s3193_s30, %s2545_s12  }
  0x6f   : > { %s2375_s15 = scalar_lea.hbm %s3185_s7, 2048 }
  0x70   : > { %p2376_p1 = scmp.ne.s32.totalorder %s3185_s7, %s2375_s15  ;;  %p2382_p0 = scmp.lt.u32.totalorder %s2375_s15, %s3185_s7 }
  0x72   : > { %p2378_p3 = pnand %p2376_p1, %p2668_p8 }
  0x74   : > { %p2379_p13 = pneg %p2378_p3 }
  0x76   : > { %p2384_p2 = pnand %p2382_p0, %p2379_p13 }
  0x78   : > { %2387 = shalt.err (!%p2384_p2)
}
  0x79   : > { %s2388_s22 = scalar_lea.vmem %s358_s14, 2048  ;;  %p2396_p4 = scmp.lt.s32.totalorder %s358_s14, %s358_s14 }
  0x7a   : > { %p2389_p5 = scmp.ne.s32.totalorder %s358_s14, %s2388_s22  ;;  %p2397_p10 = scmp.lt.s32.totalorder %s2388_s22, %s2388_s22 }
  0x7c   : > { %p2391_p7 = pnand %p2389_p5, %p2668_p8  ;;  %p2398_p11 = por %p2397_p10, %p2396_p4 }
  0x7e   : > { %p2392_p9 = pneg %p2391_p7 }
  0x80   : > { %p2399_p12 = pnand %p2398_p11, %p2392_p9 }
  0x82   : > { %2402 = shalt.err (!%p2399_p12)
}
  0x83   : > { %2146 = dma.hbm_to_vmem [thread:$0]  (!%p2652_p6), %s3185_s7, 2048, %s358_s14, [#allocation9], %s3193_s30, %s3193_s30, %s2545_s12  }
  0x84   : > { %s2548_s2 = smov [#allocation13]   ;;  %s2403_s15 = scalar_lea.hbm %s3187_s9, 2048 }
  0x85   : > { %s383_s4 = sshll.u32 %s2548_s2, 4  ;;  %p2404_p1 = scmp.ne.s32.totalorder %s3187_s9, %s2403_s15  ;;  %s384_s4 = int_to_ptr.vmem [resolvable:$true] %s383_s4 }
  0x86   : > { %p2410_p0 = scmp.lt.u32.totalorder %s2403_s15, %s3187_s9 }
  0x87   : > { %p2406_p3 = pnand %p2404_p1, %p2668_p8 }
  0x89   : > { %p2407_p13 = pneg %p2406_p3 }
  0x8b   : > { %p2412_p2 = pnand %p2410_p0, %p2407_p13 }
  0x8d   : > { %2415 = shalt.err (!%p2412_p2)
}
  0x8e   : > { %s2416_s14 = scalar_lea.vmem %s384_s4, 2048  ;;  %p2424_p4 = scmp.lt.s32.totalorder %s384_s4, %s384_s4 }
  0x8f   : > { %p2417_p5 = scmp.ne.s32.totalorder %s384_s4, %s2416_s14  ;;  %p2425_p10 = scmp.lt.s32.totalorder %s2416_s14, %s2416_s14 }
  0x91   : > { %p2419_p7 = pnand %p2417_p5, %p2668_p8  ;;  %p2426_p11 = por %p2425_p10, %p2424_p4 }
  0x93   : > { %p2420_p9 = pneg %p2419_p7 }
  0x95   : > { %p2427_p12 = pnand %p2426_p11, %p2420_p9 }
  0x97   : > { %2430 = shalt.err (!%p2427_p12)
}
  0x98   : > { %2152 = dma.hbm_to_vmem [thread:$0]  (!%p2652_p6), %s3187_s9, 2048, %s384_s4, [#allocation12], %s3193_s30, %s3193_s30, %s2545_s12  }
  0x99   : > { %s1562_s27 = sadd.s32 4294967294, %s2539_s20   ;;  %s2809_s16 = sadd.s32 1, %s2539_s20  }
  0x9a   : > { %s34_s29 = ssub.s32 %s2539_s20, %s2809_s16  ;;  %s37_s2 = sadd.s32 1, %s2535_s19 }
  0x9b   : > { %p35_p8 = scmp.eq.s32.totalorder %s34_s29, 0  ;;  %p44_p1 = scmp.ne.s32.totalorder %s2535_s19, %s2531_s18 }
  0x9c   : > { %p45_p3 = scmp.eq.s32.totalorder %s2539_s20, 0  ;;  %p50_p13 = scmp.ne.s32.totalorder %s2531_s18, %s2527_s17 }
  0x9d   : > { %s2820_s10 = scalar_select %p35_p8, %s2535_s19, %s37_s2  }
  0x9e   : > { %p2822_p0 = por %p45_p3, %p44_p1  ;;  %p3204_p2 = scmp.eq.s32.totalorder %s2636_s23, 0 }
  0x9f   : > { %p284_p5 = scmp.eq.s32.totalorder %s2636_s23, 1  ;;  %p290_p7 = scmp.eq.s32.totalorder %s1562_s27, 1 }
  0xa0   : > { %p2828_p6 = por %p3204_p2, %p50_p13  ;;  %p2167_p9 = scmp.lt.s32.totalorder %s2539_s20, 2 }
  0xa1   : > { %s400_s15 = sand.u32 1, %s2535_s19   ;;  %p2835_p4 = por %p284_p5, %p44_p1 }
  0xa2   : > { %p2839_p10 = por %p290_p7, %p50_p13  ;;  %s1571_s28 = sshll.u32 %s400_s15, 6 }
  0xa3   : > { %s3206_s21 = scalar_select %p2835_p4, 1, 0 }
  0xa4   : > { %s3207_s25 = scalar_select %p2839_p10, 1, 0 }
  0xa5   : > { %s1601_s26 = sshll.u32 %s2539_s20, 10  ;;  %s404_s27 = scalar_lea.vmem [#allocation2], %s1571_s28 }
  0xa6   : > { %s2847_s11 = scalar_lea.hbm %s3178_s0, %s1601_s26  ;;  %s411_s29 = sshll.u32 %s404_s27, 4  ;;  %s2849_s29 = int_to_ptr.vmem [resolvable:$true] %s411_s29 }
  0xa7   : > { %p2853_p11 = pnand %p2167_p9, %p2822_p0  ;;  %s2857_s30 = scalar_lea.sflag [#allocation3], %s400_s15 }
  0xa8   : > { %s2431_s14 = scalar_lea.hbm %s2847_s11, 1024  ;;  %s2436_s13 = scalar_lea.hbm %s3178_s0, 2048 }
  0xa9   : > { %p2432_p12 = scmp.ne.s32.totalorder %s2847_s11, %s2431_s14  ;;  %p2433_p8 = pneg %p2853_p11 }
  0xaa   : > { %p2437_p13 = scmp.lt.u32.totalorder %s2847_s11, %s3178_s0  ;;  %p2438_p0 = scmp.lt.u32.totalorder %s2436_s13, %s2431_s14 }
  0xab   : > { %p2434_p1 = pnand %p2433_p8, %p2432_p12  ;;  %p2440_p5 = scmp.lt.u32.totalorder %s2431_s14, %s2847_s11 }
  0xac   : > { %p2439_p2 = por %p2438_p0, %p2437_p13 }
  0xad   : > { %p2435_p3 = pneg %p2434_p1 }
  0xae   : > { %p2441_p7 = por %p2440_p5, %p2439_p2 }
  0xb0   : > { %p2442_p9 = pnand %p2441_p7, %p2435_p3 }
  0xb2   : > { %2445 = shalt.err (!%p2442_p9)
}
  0xb3   : > { %s2446_s15 = scalar_lea.vmem %s2849_s29, 1024  ;;  %s2549_s28 = smov [#allocation2]  }
  0xb4   : > { %p2447_p12 = scmp.ne.s32.totalorder %s2849_s29, %s2446_s15  ;;  %s2451_s26 = sshll.u32 %s2549_s28, 4  ;;  %s2452_s26 = int_to_ptr.vmem [resolvable:$false] %s2451_s26 }
  0xb5   : > { %s2453_s22 = scalar_lea.vmem %s2452_s26, 2048  ;;  %p2454_p4 = scmp.lt.s32.totalorder %s2849_s29, %s2452_s26 }
  0xb6   : > { %p2449_p1 = pnand %p2447_p12, %p2433_p8  ;;  %p2455_p13 = scmp.lt.s32.totalorder %s2453_s22, %s2446_s15 }
  0xb8   : > { %p2450_p10 = pneg %p2449_p1  ;;  %p2456_p0 = por %p2455_p13, %p2454_p4 }
  0xba   : > { %p2457_p2 = pnand %p2456_p0, %p2450_p10 }
  0xbc   : > { %2460 = shalt.err (!%p2457_p2)
}
  0xbd   : > { %s3209_s14 = smov 128   ;;  %p3210_p8 = scmp.ne.s32.totalorder %s3199_s24, 0 }
  0xbe   : > { %2156 = dma.hbm_to_vmem [thread:$0]  (!%p2853_p11), %s2847_s11, 1024, %s2849_s29, %s2857_s30, %s3209_s14, %s3209_s14, %s2545_s12  }
  0xbf   : > { %423 = sbr.rel (%p3210_p8) target bundleno = 1290 (0x50a), region = 64  ;;  %s2891_s13 = sand.u32 (!%p3210_p8), 1, %s2531_s18  }
  0xc0   : > { %s1575_s27 = sshll.u32 (!%p3210_p8), %s2891_s13, 6  ;;  %s426_s15 = scalar_lea.sflag (!%p3210_p8), [#allocation3], %s2891_s13 }
  0xc1   : > { %s2895_s28 = scalar_lea.vmem (!%p3210_p8), [#allocation2], %s1575_s27 }
  0xc6   : > { %2506 = dma.done.wait (%p2828_p6), %s426_s15, 1024  }
  0xc7   : > { %2508 = vsyncadd (%p2828_p6), %s426_s15, 4294966272  ;;  %p3211_p4 = scmp.eq.s32.totalorder %s2636_s23, 0 }
  0xc9   : > { %2510 = dma.done.wait (%p3211_p4), [#allocation6], 3072   ;;  %p3212_p10 = pmov %p3211_p4 }
  0xca   : > { %p3213_p11 = pmov %p3211_p4 }
  0xcb   : > { %2512 = vsyncadd (%p3212_p10), [#allocation6], 4294964224 }
  0xcc   : > { %2514 = dma.done.wait (%p3213_p11), [#allocation9], 4096   ;;  %p3214_p3 = pmov %p3211_p4 }
  0xce   : > { %2516 = vsyncadd (%p3214_p3), [#allocation9], 4294963200  ;;  %p3215_p5 = pmov %p3214_p3 }
  0xcf   : > { %p3216_p7 = pmov %p3214_p3 }
  0xd0   : > { %2518 = dma.done.wait (%p3215_p5), [#allocation12], 4096  }
  0xd1   : > { %2520 = vsyncadd (%p3216_p7), [#allocation12], 4294963200  ;;  %v2550_v0 = vmov 0.0|0.0   ;;  %vm2551_vm0 = vmmov 0   ;;  %v2552_v1 = vmov 0.0   ;;  %v2553_v2 = vmov 0  }
  0xd2   : > { %1946 = vmatprep.subr.bf16.mxu0 %v2550_v0  ;;  %1750 = vmatprep.mubr.msk.f32.mxu0 %vm2551_vm0, %v2552_v1  ;;  %v533_v3 = vld [vmem:[#allocation7] sm:$0xff]  ;;  %v534_v4 = vld [vmem:[#allocation7 + $0x8] sm:$0xff]  ;;  %v535_v8 = vld [vmem:[#allocation7 + $0x10] sm:$0xff]  ;;  %s3217_s2 = sld [smem:[#allocation21_spill]]  ;;  %s3218_s14 = sld [smem:[#allocation22_spill]] }
  0xd3   : > { %761 = vmatprep.mubr.bf16.mxu1 %v2553_v2  ;;  %v1947_v5 = vpack.c.bf16 %v534_v4, %v533_v3  ;;  %v2917_v6 = vld [vmem:[#allocation8 + $0x4] ss:$8 sps:$4 sm:$0xff]   ;;  %v2919_v7 = vld [vmem:[#allocation8] ss:$8 sps:$4 sm:$0xff]   ;;  %v536_v9 = vld [vmem:[#allocation7 + $0x18] sm:$0xff]  ;;  %s1598_s27 = sshll.u32 %s2636_s23, 4 }
  0xd4   : > { %729 = vmatprep.subr.bf16.mxu1 %v2917_v6  ;;  %v1950_v10 = vpack.c.bf16 %v536_v9, %v535_v8  ;;  %v2922_v11 = vld [vmem:[#allocation8 + $0x14] ss:$8 sps:$4 sm:$0xff]   ;;  %v2924_v12 = vld [vmem:[#allocation8 + $0x10] ss:$8 sps:$4 sm:$0xff]   ;;  %v537_v13 = vld [vmem:[#allocation7 + $0x20] sm:$0xff]  ;;  %s490_s15 = scalar_lea.vmem [#allocation14], %s2891_s13 }
  0xd5   : > { %1948 = vmatpush3.bf16.msra.mxu0 %v1947_v5  ;;  %730 = vmatpush1.bf16.msra.mxu1 %v2919_v7  ;;  %v538_v14 = vld [vmem:[#allocation7 + $0x28] sm:$0xff]  ;;  %v539_v18 = vld [vmem:[#allocation7 + $0x30] sm:$0xff]  ;;  %v540_v19 = vld [vmem:[#allocation7 + $0x38] sm:$0xff]  ;;  %s3219_s12 = sld [smem:[#allocation23_spill]]  ;;  %s1427_s11 = scalar_lea.sflag [#allocation4], %s2891_s13 }
  0xd6   : > { %1949 = vmatprep.subr.bf16.mxu0 %v2550_v0  ;;  %731 = vmatprep.subr.bf16.mxu1 %v2922_v11  ;;  %v2929_v15 = vld [vmem:[#allocation8 + $0x24] ss:$8 sps:$4 sm:$0xff]   ;;  %v1953_v16 = vpack.c.bf16 %v538_v14, %v537_v13  ;;  %v2931_v17 = vld [vmem:[#allocation8 + $0x20] ss:$8 sps:$4 sm:$0xff]   ;;  %v2936_v20 = vld [vmem:[#allocation8 + $0x34] ss:$8 sps:$4 sm:$0xff]   ;;  %v1956_v21 = vpack.c.bf16 %v540_v19, %v539_v18 }
  0xd7   : > { %v2938_v22 = vld [vmem:[#allocation8 + $0x30] ss:$8 sps:$4 sm:$0xff]   ;;  %v541_v23 = vld [vmem:[#allocation7 + $0x40] sm:$0xff]  ;;  %v542_v24 = vld [vmem:[#allocation7 + $0x48] sm:$0xff]  ;;  %p3220_p9 = scmp.ne.s32.totalorder %s3206_s21, 0  ;;  %s2554_s23 = smov [#allocation14]  }
  0xd8   : > { %v2943_v25 = vld [vmem:[#allocation8 + $0x44] ss:$8 sps:$4 sm:$0xff]   ;;  %v2945_v26 = vld [vmem:[#allocation8 + $0x40] ss:$8 sps:$4 sm:$0xff]   ;;  %v1959_v27 = vpack.c.bf16 %v542_v24, %v541_v23  ;;  %v543_v28 = vld [vmem:[#allocation7 + $0x50] sm:$0xff] }
  0xd9   : > { %1951 = vmatpush3.bf16.msra.mxu0 %v1950_v10  ;;  %732 = vmatpush1.bf16.msra.mxu1 %v2924_v12  ;;  %v544_v29 = vld [vmem:[#allocation7 + $0x58] sm:$0xff]  ;;  %v2950_v30 = vld [vmem:[%s2895_s28] sm:$0xff]  ;;  %v2953_v31 = vld [vmem:[%s2895_s28 + $0x8] sm:$0xff] }
  0xda   : > { %1952 = vmatprep.subr.bf16.mxu0 %v2550_v0  ;;  %733 = vmatprep.subr.bf16.mxu1 %v2929_v15  ;;  %v2956_v32 = vld [vmem:[%s2895_s28 + $0x10] sm:$0xff]  ;;  %v500_v34 = vadd.f32 %v2953_v31, %v2950_v30  ;;  %v545_v36 = vld [vmem:[#allocation7 + $0x60] sm:$0xff]  ;;  %v546_v37 = vld [vmem:[#allocation7 + $0x68] sm:$0xff]  ;;  %v1962_v39 = vpack.c.bf16 %v544_v29, %v543_v28 }
  0xdb   : > { %v2959_v33 = vld [vmem:[#allocation8 + $0x54] ss:$8 sps:$4 sm:$0xff]   ;;  %v2963_v35 = vld [vmem:[#allocation8 + $0x50] ss:$8 sps:$4 sm:$0xff]   ;;  %v2968_v40 = vld [vmem:[#allocation8 + $0x64] ss:$8 sps:$4 sm:$0xff]   ;;  %v1965_v55 = vpack.c.bf16 %v546_v37, %v545_v36  ;;  %s3134_s4 = scalar_lea.hbm %s3219_s12, %s1598_s27 }
  0xdc   : > { %v2966_v38 = vld [vmem:[%s2895_s28 + $0x18] sm:$0xff]  ;;  %v496_v41 = vld [vmem:[%s2895_s28 + $0x20] sm:$0xff]  ;;  %v497_v42 = vld [vmem:[%s2895_s28 + $0x28] sm:$0xff]  ;;  %v501_v43 = vadd.f32 %v500_v34, %v2956_v32 }
  0xdd   : > { %1954 = vmatpush3.bf16.msra.mxu0 %v1953_v16  ;;  %734 = vmatpush1.bf16.msra.mxu1 %v2931_v17  ;;  %v498_v44 = vld [vmem:[%s2895_s28 + $0x30] sm:$0xff]  ;;  %v521_v45 = vld [vmem:[#allocation5 + $0x20] sm:$0xff]  ;;  %v522_v46 = vld [vmem:[#allocation5 + $0x28] sm:$0xff] }
  0xde   : > { %1955 = vmatprep.subr.bf16.mxu0 %v2550_v0  ;;  %735 = vmatprep.subr.bf16.mxu1 %v2936_v20  ;;  %v499_v47 = vld [vmem:[%s2895_s28 + $0x38] sm:$0xff]  ;;  %v502_v48 = vadd.f32 %v501_v43, %v2966_v38  ;;  %v2979_v49 = vadd.f32 %v521_v45, %v496_v41  ;;  %v2981_v50 = vadd.f32 %v522_v46, %v497_v42  ;;  %v523_v51 = vld [vmem:[#allocation5 + $0x30] sm:$0xff]  ;;  %v2991_v58 = vld [vmem:[#allocation8 + $0x60] ss:$8 sps:$4 sm:$0xff]   ;;  %s1439_s28 = sshll.u32 %s490_s15, 4  ;;  %s3136_s28 = int_to_ptr.vmem [resolvable:$true] %s1439_s28 }
  0xdf   : > { %v524_v52 = vld [vmem:[#allocation5 + $0x38] sm:$0xff]  ;;  %v2983_v53 = vadd.f32 %v523_v51, %v498_v44  ;;  %v547_v59 = vld [vmem:[#allocation7 + $0x70] sm:$0xff]  ;;  %v515_v19 = vld [vmem:[%s3179_s1] sm:$0x1]  ;;  %s2461_s29 = scalar_lea.vmem %s3136_s28, 16 }
  0xe0   : > { %v2985_v54 = vadd.f32 %v524_v52, %v499_v47  ;;  %v503_v56 = vadd.f32 %v502_v48, %v496_v41  ;;  %v772_v57 = vpack.c.bf16 %v2981_v50, %v2979_v49  ;;  %v548_v60 = vld [vmem:[#allocation7 + $0x78] sm:$0xff]  ;;  %v847_v23 = vld [vmem:[#allocation10] sm:$0xff]  ;;  %v848_v24 = vld [vmem:[#allocation10 + $0x8] sm:$0xff]  ;;  %p2462_p6 = scmp.ne.s32.totalorder %s3136_s28, %s2461_s29 }
  0xe1   : > { %1957 = vmatpush3.bf16.msra.mxu0 %v1956_v21  ;;  %736 = vmatpush1.bf16.msra.mxu1 %v2938_v22  ;;  %v2996_v62 = vld [vmem:[#allocation8 + $0x74] ss:$8 sps:$4 sm:$0xff]   ;;  %v1968_v3 = vpack.c.bf16 %v548_v60, %v547_v59  ;;  %v3000_v5 = vld [vmem:[#allocation8 + $0x70] ss:$8 sps:$4 sm:$0xff]   ;;  %v3009_v28 = vpack.c.bf16 %v848_v24, %v847_v23  ;;  %v851_v37 = vld [vmem:[#allocation10 + $0x20] sm:$0xff] }
  0xe2   : > { %1958 = vmatprep.subr.bf16.mxu0 %v2550_v0  ;;  %737 = vmatprep.subr.bf16.mxu1 %v2943_v25  ;;  %v773_v61 = vpack.c.bf16 %v2985_v54, %v2983_v53  ;;  %v504_v63 = vadd.f32 %v503_v56, %v497_v42  ;;  %v850_v34 = vld [vmem:[#allocation10 + $0x18] sm:$0xff]  ;;  %v853_v41 = vld [vmem:[#allocation10 + $0x30] sm:$0xff]  ;;  %v855_v43 = vld [vmem:[#allocation10 + $0x40] sm:$0xff]  ;;  %p2463_p12 = pnand %p2462_p6, %p3220_p9 }
  0xe3   : > { %v858_v45 = vld [vmem:[#allocation10 + $0x58] sm:$0xff]  ;;  %v860_v46 = vld [vmem:[#allocation10 + $0x68] sm:$0xff]  ;;  %v637_v49 = vld [vmem:[%s3184_s6] sm:$0x3] }
  0xe4   : > { %v505_v4 = vadd.f32 %v504_v63, %v498_v44  ;;  %v856_v44 = vld [vmem:[#allocation10 + $0x48] sm:$0xff]  ;;  %v862_v56 = vld [vmem:[#allocation10 + $0x78] sm:$0xff]  ;;  %v549_v54 = vld [vmem:[%s3217_s2] sm:$0x1]  ;;  %p2464_p1 = pneg %p2463_p12  ;;  %s2465_s2 = sshll.u32 %s2554_s23, 4  ;;  %s2466_s2 = int_to_ptr.vmem [resolvable:$false] %s2465_s2 }
  0xe5   : > { %1960 = vmatpush3.bf16.msra.mxu0 %v1959_v27  ;;  %738 = vmatpush1.bf16.msra.mxu1 %v2945_v26  ;;  %s2467_s26 = scalar_lea.vmem %s2466_s2, 32  ;;  %p2468_p13 = scmp.lt.s32.totalorder %s3136_s28, %s2466_s2 }
  0xe6   : > { %1961 = vmatprep.subr.bf16.mxu0 %v2550_v0  ;;  %739 = vmatprep.subr.bf16.mxu1 %v2959_v33  ;;  %v506_v8 = vadd.f32 %v505_v4, %v499_v47  ;;  %p2469_p0 = scmp.lt.s32.totalorder %s2467_s26, %s2461_s29 }
  0xe8   : > { %v507_v9 = vrot.slane %v506_v8, 4  ;;  %p2470_p2 = por %p2469_p0, %p2468_p13 }
  0xe9   : > { %1963 = vmatpush3.bf16.msra.mxu0 %v1962_v39  ;;  %740 = vmatpush1.bf16.msra.mxu1 %v2963_v35  ;;  %v852_v39 = vld [vmem:[#allocation10 + $0x28] sm:$0xff] }
  0xea   : > { %1964 = vmatprep.subr.bf16.mxu0 %v2550_v0  ;;  %741 = vmatprep.subr.bf16.mxu1 %v2968_v40  ;;  %v508_v10 = vadd.f32 %v507_v9, %v506_v8  ;;  %p2471_p8 = pnand %p2470_p2, %p2464_p1 }
  0xec   : > { %v509_v13 = vrot.slane %v508_v10, 2 }
  0xed   : > { %1966 = vmatpush3.bf16.msra.mxu0 %v1965_v55  ;;  %742 = vmatpush1.bf16.msra.mxu1 %v2991_v58  ;;  %v861_v55 = vld [vmem:[#allocation10 + $0x70] sm:$0xff] }
  0xee   : > { %1967 = vmatprep.subr.bf16.mxu0 %v2550_v0  ;;  %743 = vmatprep.subr.bf16.mxu1 %v2996_v62  ;;  %v510_v14 = vadd.f32 %v509_v13, %v508_v10  ;;  %v1992_v50 = vpack.c.bf16 %v862_v56, %v861_v55  ;;  %v1126_v55 = vld [vmem:[#allocation11 + $0x10] sm:$0xff]  ;;  %v1127_v56 = vld [vmem:[#allocation11 + $0x18] sm:$0xff] }
  0xf0   : > { %v511_v16 = vrot.slane %v510_v14, 1 }
  0xf1   : > { %1969 = vmatpush3.bf16.msra.mxu0 %v1968_v3  ;;  %744 = vmatpush1.bf16.msra.mxu1 %v3000_v5 }
  0xf2   : > { %774 = vmatprep.subr.bf16.mxu0 %v2917_v6  ;;  %1970 = vmatprep.subr.bf16.mxu1 %v2550_v0  ;;  %v512_v18 = vadd.f32 %v511_v16, %v510_v14  ;;  %v849_v6 = vld [vmem:[#allocation10 + $0x10] sm:$0xff] }
  0xf3   : > { %v1974_v36 = vpack.c.bf16 %v850_v34, %v849_v6 }
  0xf4   : > { %v514_v21 = vmul.f32 0.015625, %v512_v18 }
  0xf6   : > { %v516_v27 = vadd.f32 %v515_v19, %v514_v21 }
  0xf8   : > { %1751 = vmatmul.mubr.f32.vlgmr.msra.gmra.mrb[0].mxu0 %v516_v27  ;;  %v620_v29 = vpack.c.bf16 %v516_v27, %v516_v27 }
  0xf9   : > { %775 = vmatpush1.bf16.msra.mxu0 %v2919_v7  ;;  %806 = vmatprep.mubr.bf16.mxu0 %v2553_v2  ;;  %v1977_v7 = vpack.c.bf16 %v852_v39, %v851_v37 }
  0xfa   : > { %762 = vmatmul.mubr.bf16.vlgmr.msra.gmra.mrb[0].mxu1 %v620_v29  ;;  %776 = vmatprep.subr.bf16.mxu0 %v2922_v11  ;;  %v854_v11 = vld [vmem:[#allocation10 + $0x38] sm:$0xff] }
  0xfb   : > { %1972 = vmatpush3.bf16.msra.mxu1 %v3009_v28  ;;  %1785 = vmatprep.mubr.msk.f32.mxu1 %vm2551_vm0, %v2552_v1  ;;  %v1980_v42 = vpack.c.bf16 %v854_v11, %v853_v41 }
  0xfc   : > { %1973 = vmatprep.subr.bf16.mxu1 %v2550_v0 }
  0xfd   : > { %777 = vmatpush1.bf16.msra.mxu0 %v2924_v12  ;;  %v1983_v12 = vpack.c.bf16 %v856_v44, %v855_v43 }
  0xfe   : > { %778 = vmatprep.subr.bf16.mxu0 %v2929_v15  ;;  %v857_v15 = vld [vmem:[#allocation10 + $0x50] sm:$0xff] }
  0xff   : > { %1975 = vmatpush3.bf16.msra.mxu1 %v1974_v36 }
 0x100   : > { %1976 = vmatprep.subr.bf16.mxu1 %v2550_v0 }
 0x101   : > { %779 = vmatpush1.bf16.msra.mxu0 %v2931_v17  ;;  %v1986_v17 = vpack.c.bf16 %v858_v45, %v857_v15 }
 0x102   : > { %780 = vmatprep.subr.bf16.mxu0 %v2936_v20  ;;  %v859_v20 = vld [vmem:[#allocation10 + $0x60] sm:$0xff] }
 0x103   : > { %1978 = vmatpush3.bf16.msra.mxu1 %v1977_v7  ;;  %v1989_v47 = vpack.c.bf16 %v860_v46, %v859_v20 }
 0x104   : > { %1979 = vmatprep.subr.bf16.mxu1 %v2550_v0 }
 0x105   : > { %781 = vmatpush1.bf16.msra.mxu0 %v2938_v22  ;;  %v517_v22 = vld [vmem:[#allocation5] sm:$0xff] }
 0x106   : > { %782 = vmatprep.subr.bf16.mxu0 %v2943_v25  ;;  %v518_v25 = vld [vmem:[#allocation5 + $0x8] sm:$0xff]  ;;  %v525_v48 = vadd.f32 %v517_v22, %v2950_v30 }
 0x107   : > { %1981 = vmatpush3.bf16.msra.mxu1 %v1980_v42 }
 0x108   : > { %1982 = vmatprep.subr.bf16.mxu1 %v2550_v0 }
 0x109   : > { %783 = vmatpush1.bf16.msra.mxu0 %v2945_v26  ;;  %v526_v26 = vadd.f32 %v518_v25, %v2953_v31 }
 0x10a   : > { %784 = vmatprep.subr.bf16.mxu0 %v2959_v33 }
 0x10b   : > { %1984 = vmatpush3.bf16.msra.mxu1 %v1983_v12  ;;  %v770_v33 = vpack.c.bf16 %v526_v26, %v525_v48 }
 0x10c   : > { %1985 = vmatprep.subr.bf16.mxu1 %v2550_v0 }
 0x10d   : > { %785 = vmatpush1.bf16.msra.mxu0 %v2963_v35  ;;  %v519_v35 = vld [vmem:[#allocation5 + $0x10] sm:$0xff] }
 0x10e   : > { %786 = vmatprep.subr.bf16.mxu0 %v2968_v40  ;;  %v520_v40 = vld [vmem:[#allocation5 + $0x18] sm:$0xff]  ;;  %v527_v30 = vadd.f32 %v519_v35, %v2956_v32  ;;  %v719_v32 = vlaneseq }
 0x10f   : > { %1987 = vmatpush3.bf16.msra.mxu1 %v1986_v17  ;;  %v528_v31 = vadd.f32 %v520_v40, %v2966_v38 }
 0x110   : > { %1988 = vmatprep.subr.bf16.mxu1 %v2550_v0  ;;  %v720_v38 = vshrl.u32 %v719_v32, 7  ;;  %v1124_v32 = vld [vmem:[#allocation11] sm:$0xff] }
 0x111   : > { %787 = vmatpush1.bf16.msra.mxu0 %v2991_v58  ;;  %v771_v51 = vpack.c.bf16 %v528_v31, %v527_v30 }
 0x112   : > { %788 = vmatprep.subr.bf16.mxu0 %v2996_v62  ;;  %v725_v52 = vsub.s32 1, %v720_v38  ;;  %v3058_v53 = vsub.s32 0, %v720_v38  ;;  %v1125_v38 = vld [vmem:[#allocation11 + $0x8] sm:$0xff] }
 0x113   : > { %1990 = vmatpush3.bf16.msra.mxu1 %v1989_v47 }
 0x114   : > { %1991 = vmatprep.subr.bf16.mxu1 %v2550_v0 }
 0x115   : > { %789 = vmatpush1.bf16.msra.mxu0 %v3000_v5 }
 0x116   : > { %1995 = vmatprep.subr.bf16.mxu0 %v3009_v28 }
 0x117   : > { %1993 = vmatpush3.bf16.msra.mxu1 %v1992_v50 }
 0x118   : > { %807 = vmatmul.mubr.bf16.vlgmr.msra.gmra.mrb[4].mxu0 %v770_v33  ;;  %2026 = vmatprep.subr.bf16.mxu1 %v2550_v0 }
 0x119   : > { %816 = vmatprep.mubr.bf16.mxu0 %v2553_v2  ;;  %1997 = vmatpush3.bf16.msra.mxu0 %v3009_v28 }
 0x11a   : > { %1999 = vmatprep.subr.bf16.mxu0 %v1974_v36 }
 0x11d   : > { %2001 = vmatpush3.bf16.msra.mxu0 %v1974_v36 }
 0x11e   : > { %2003 = vmatprep.subr.bf16.mxu0 %v1977_v7 }
 0x120   : > { %817 = vmatmul.mubr.bf16.gmra.mrb[8].mxu0 %v771_v51 }
 0x121   : > { %826 = vmatprep.mubr.bf16.mxu0 %v2553_v2  ;;  %2005 = vmatpush3.bf16.msra.mxu0 %v1977_v7 }
 0x122   : > { %2007 = vmatprep.subr.bf16.mxu0 %v1980_v42 }
 0x125   : > { %2009 = vmatpush3.bf16.msra.mxu0 %v1980_v42 }
 0x126   : > { %2011 = vmatprep.subr.bf16.mxu0 %v1983_v12 }
 0x128   : > { %827 = vmatmul.mubr.bf16.gmra.mrb[12].mxu0 %v772_v57  ;;  %v722_v57 = vrot.slane %v637_v49, %v3058_v53 }
 0x129   : > { %836 = vmatprep.mubr.bf16.mxu0 %v2553_v2  ;;  %2013 = vmatpush3.bf16.msra.mxu0 %v1983_v12  ;;  %v3055_v2 = vrot.slane %v637_v49, %v725_v52  ;;  %v2027_v52 = vpack.c.bf16 %v1125_v38, %v1124_v32  ;;  %v2030_v49 = vpack.c.bf16 %v1127_v56, %v1126_v55 }
 0x12a   : > { %2015 = vmatprep.subr.bf16.mxu0 %v1986_v17 }
 0x12d   : > { %2017 = vmatpush3.bf16.msra.mxu0 %v1986_v17 }
 0x12e   : > { %2019 = vmatprep.subr.bf16.mxu0 %v1989_v47 }
 0x130   : > { %837 = vmatmul.mubr.bf16.gmra.mrb[16].mxu0 %v773_v61 }
 0x131   : > { %2021 = vmatpush3.bf16.msra.mxu0 %v1989_v47 }
 0x132   : > { %2023 = vmatprep.subr.bf16.mxu0 %v1992_v50 }
 0x135   : > { %2025 = vmatpush3.bf16.msra.mxu0 %v1992_v50  ;;  %v1128_v50 = vld [vmem:[#allocation11 + $0x20] sm:$0xff] }
 0x136   : > { %2051 = vmatprep.subr.bf16.mxu0 %v2027_v52 }
 0x1cb   : > { %v616_v58 = vpop.f32.mrb[0].mxu0 }
 0x1cc   : > { %v617_v59 = vadd.f32 %v616_v58, %v549_v54  ;;  %v1752_v60 = vpop.f32.mrb[1].mxu0  ;;  %v1131_v58 = vld [vmem:[#allocation11 + $0x38] sm:$0xff] }
 0x1cd   : > { %v763_v61 = vpop.f32.mrb[0].mxu1  ;;  %v1132_v60 = vld [vmem:[#allocation11 + $0x40] sm:$0xff] }
 0x1ce   : > { %v764_v62 = vadd.f32 %v763_v61, %v722_v57  ;;  %v765_v63 = vpop.f32.mrb[1].mxu1  ;;  %v937_v10 = vrot.slane %v617_v59, %v3058_v53  ;;  %v1133_v61 = vld [vmem:[#allocation11 + $0x48] sm:$0xff] }
 0x1cf   : > { %v3065_v3 = vadd.f32 %v765_v63, %v3055_v2  ;;  %v767_v4 = vpop.f32.mrb[2].mxu1  ;;  %v1134_v63 = vld [vmem:[#allocation11 + $0x50] sm:$0xff] }
 0x1d0   : > { %v863_v5 = vmul.f32 %v764_v62, %v617_v59  ;;  %v768_v8 = vpop.f32.mrb[3].mxu1  ;;  %v2039_v62 = vpack.c.bf16 %v1133_v61, %v1132_v60  ;;  %v1135_v4 = vld [vmem:[#allocation11 + $0x58] sm:$0xff] }
 0x1d1   : > { %v2042_v8 = vpack.c.bf16 %v1135_v4, %v1134_v63 }
 0x1d2   : > { %1786 = vmatmul.mubr.f32.vlgmr.msra.gmra.mrb[4].mxu1 %v863_v5 }
 0x1d3   : > { %1864 = vmatprep.mubr.msk.f32.mxu1 %vm2551_vm0, %v2552_v1  ;;  %2028 = vmatpush3.bf16.msra.mxu1 %v2027_v52 }
 0x1d4   : > { %2029 = vmatprep.subr.bf16.mxu1 %v2550_v0 }
 0x1d7   : > { %2031 = vmatpush3.bf16.msra.mxu1 %v2030_v49 }
 0x1d8   : > { %2032 = vmatprep.subr.bf16.mxu1 %v2550_v0 }
 0x1eb   : > { %v808_v9 = vpop.f32.mrb[4].mxu0 }
 0x1ec   : > { %v809_v13 = vadd.f32 %v808_v9, %v722_v57  ;;  %v810_v14 = vpop.f32.mrb[5].mxu0 }
 0x1ed   : > { %v3071_v16 = vadd.f32 %v810_v14, %v3055_v2  ;;  %v812_v18 = vpop.f32.mrb[6].mxu0 }
 0x1ee   : > { %v938_v19 = vmul.f32 %v937_v10, %v809_v13  ;;  %v813_v21 = vadd.f32 %v812_v18, %v722_v57  ;;  %v814_v23 = vpop.f32.mrb[7].mxu0  ;;  %v1137_v13 = vld [vmem:[#allocation11 + $0x68] sm:$0xff]  ;;  %v1138_v18 = vld [vmem:[#allocation11 + $0x70] sm:$0xff] }
 0x1ef   : > { %v3074_v24 = vadd.f32 %v814_v23, %v3055_v2 }
 0x1f0   : > { %v939_v27 = vmul.f32 %v937_v10, %v813_v21  ;;  %1820 = vmatprep.mubr.f32.mxu0 %v938_v19  ;;  %v1139_v19 = vld [vmem:[#allocation11 + $0x78] sm:$0xff] }
 0x1f1   : > { %v2048_v21 = vpack.c.bf16 %v1139_v19, %v1138_v18 }
 0x1f2   : > { %1821 = vmatmul.mubr.f32.vlgmr.msra.gmra.mrb[2].mxu0 %v939_v27 }
 0x1f3   : > { %v818_v28 = vpop.f32.mrb[8].mxu0  ;;  %2053 = vmatpush3.bf16.msra.mxu0 %v2027_v52 }
 0x1f4   : > { %v819_v29 = vadd.f32 %v818_v28, %v722_v57  ;;  %v820_v6 = vpop.f32.mrb[9].mxu0  ;;  %2055 = vmatprep.subr.bf16.mxu0 %v2030_v49 }
 0x1f5   : > { %v3077_v34 = vadd.f32 %v820_v6, %v3055_v2  ;;  %v822_v36 = vpop.f32.mrb[10].mxu0 }
 0x1f6   : > { %v940_v37 = vmul.f32 %v937_v10, %v819_v29  ;;  %v823_v39 = vadd.f32 %v822_v36, %v722_v57  ;;  %v824_v7 = vpop.f32.mrb[11].mxu0 }
 0x1f7   : > { %v3080_v41 = vadd.f32 %v824_v7, %v3055_v2  ;;  %2057 = vmatpush3.bf16.msra.mxu0 %v2030_v49 }
 0x1f8   : > { %v941_v11 = vmul.f32 %v937_v10, %v823_v39  ;;  %1823 = vmatprep.mubr.f32.mxu0 %v940_v37 }
 0x1fa   : > { %1824 = vmatmul.mubr.f32.gmra.mrb[20].mxu0 %v941_v11 }
 0x1fb   : > { %v828_v42 = vpop.f32.mrb[12].mxu0 }
 0x1fc   : > { %v829_v43 = vadd.f32 %v828_v42, %v722_v57  ;;  %v830_v44 = vpop.f32.mrb[13].mxu0 }
 0x1fd   : > { %v3083_v12 = vadd.f32 %v830_v44, %v3055_v2  ;;  %v832_v15 = vpop.f32.mrb[14].mxu0 }
 0x1fe   : > { %v942_v45 = vmul.f32 %v937_v10, %v829_v43  ;;  %v833_v17 = vadd.f32 %v832_v15, %v722_v57  ;;  %v834_v20 = vpop.f32.mrb[15].mxu0 }
 0x1ff   : > { %v3086_v46 = vadd.f32 %v834_v20, %v3055_v2 }
 0x200   : > { %v943_v22 = vmul.f32 %v937_v10, %v833_v17  ;;  %1826 = vmatprep.mubr.f32.mxu0 %v942_v45 }
 0x202   : > { %1827 = vmatmul.mubr.f32.gmra.mrb[22].mxu0 %v943_v22 }
 0x203   : > { %v838_v25 = vpop.f32.mrb[16].mxu0 }
 0x204   : > { %v839_v47 = vadd.f32 %v838_v25, %v722_v57  ;;  %v840_v48 = vpop.f32.mrb[17].mxu0 }
 0x205   : > { %v3089_v26 = vadd.f32 %v840_v48, %v3055_v2  ;;  %v842_v33 = vpop.f32.mrb[18].mxu0 }
 0x206   : > { %v944_v35 = vmul.f32 %v937_v10, %v839_v47  ;;  %v843_v40 = vadd.f32 %v842_v33, %v722_v57  ;;  %v844_v30 = vpop.f32.mrb[19].mxu0  ;;  %v1130_v57 = vld [vmem:[#allocation11 + $0x30] sm:$0xff] }
 0x207   : > { %v3092_v31 = vadd.f32 %v844_v30, %v3055_v2  ;;  %v1129_v2 = vld [vmem:[#allocation11 + $0x28] sm:$0xff]  ;;  %v2036_v59 = vpack.c.bf16 %v1131_v58, %v1130_v57 }
 0x208   : > { %v945_v51 = vmul.f32 %v937_v10, %v843_v40  ;;  %1829 = vmatprep.mubr.f32.mxu0 %v944_v35  ;;  %v2033_v54 = vpack.c.bf16 %v1129_v2, %v1128_v50  ;;  %v1136_v10 = vld [vmem:[#allocation11 + $0x60] sm:$0xff] }
 0x209   : > { %v2045_v14 = vpack.c.bf16 %v1137_v13, %v1136_v10 }
 0x20a   : > { %1830 = vmatmul.mubr.f32.gmra.mrb[24].mxu0 %v945_v51  ;;  %2034 = vmatpush3.bf16.msra.mxu1 %v2033_v54 }
 0x20b   : > { %2059 = vmatprep.subr.bf16.mxu0 %v2033_v54  ;;  %2035 = vmatprep.subr.bf16.mxu1 %v2550_v0 }
 0x20c   : > { %2061 = vmatpush3.bf16.msra.mxu0 %v2033_v54 }
 0x20d   : > { %2063 = vmatprep.subr.bf16.mxu0 %v2036_v59 }
 0x20e   : > { %2037 = vmatpush3.bf16.msra.mxu1 %v2036_v59 }
 0x20f   : > { %2038 = vmatprep.subr.bf16.mxu1 %v2550_v0 }
 0x210   : > { %2065 = vmatpush3.bf16.msra.mxu0 %v2036_v59 }
 0x211   : > { %2067 = vmatprep.subr.bf16.mxu0 %v2039_v62 }
 0x212   : > { %2040 = vmatpush3.bf16.msra.mxu1 %v2039_v62 }
 0x213   : > { %2041 = vmatprep.subr.bf16.mxu1 %v2550_v0 }
 0x214   : > { %2069 = vmatpush3.bf16.msra.mxu0 %v2039_v62 }
 0x215   : > { %2071 = vmatprep.subr.bf16.mxu0 %v2042_v8 }
 0x216   : > { %2043 = vmatpush3.bf16.msra.mxu1 %v2042_v8 }
 0x217   : > { %2044 = vmatprep.subr.bf16.mxu1 %v2550_v0 }
 0x218   : > { %2073 = vmatpush3.bf16.msra.mxu0 %v2042_v8 }
 0x219   : > { %2075 = vmatprep.subr.bf16.mxu0 %v2045_v14 }
 0x21a   : > { %2046 = vmatpush3.bf16.msra.mxu1 %v2045_v14 }
 0x21b   : > { %2047 = vmatprep.subr.bf16.mxu1 %v2550_v0 }
 0x21c   : > { %2077 = vmatpush3.bf16.msra.mxu0 %v2045_v14 }
 0x21d   : > { %2079 = vmatprep.subr.bf16.mxu0 %v2048_v21 }
 0x21e   : > { %2049 = vmatpush3.bf16.msra.mxu1 %v2048_v21 }
 0x21f   : > { %2082 = vmatprep.subr.bf16.mxu1 %v2550_v0 }
 0x220   : > { %2081 = vmatpush3.bf16.msra.mxu0 %v2048_v21 }
 0x2a5   : > { %v3098_v5 = vpop.f32.mrb[4].mxu1 }
 0x2a6   : > { %v1787_v9 = vpop.f32.mrb[5].mxu1 }
 0x2c5   : > { %v1822_v23 = vpop.f32.mrb[2].mxu0 }
 0x2c6   : > { %v1012_v27 = vpop.f32.mrb[3].mxu0 }
 0x2cd   : > { %v1825_v28 = vpop.f32.mrb[20].mxu0 }
 0x2ce   : > { %v1022_v29 = vpop.f32.mrb[21].mxu0 }
 0x2d5   : > { %v1828_v6 = vpop.f32.mrb[22].mxu0 }
 0x2d6   : > { %v1052_v36 = vmax.f32 %v1822_v23, %v1828_v6  ;;  %v1032_v37 = vpop.f32.mrb[23].mxu0 }
 0x2d7   : > { %v1051_v39 = vmax.f32 %v1012_v27, %v1032_v37 }
 0x2d9   : > { %v1055_v7 = vmax.f32 %v1051_v39, %v1052_v36 }
 0x2dd   : > { %v1831_v11 = vpop.f32.mrb[24].mxu0 }
 0x2de   : > { %v1054_v42 = vmax.f32 %v1825_v28, %v1831_v11  ;;  %v1042_v43 = vpop.f32.mrb[25].mxu0 }
 0x2df   : > { %v1053_v44 = vmax.f32 %v1022_v29, %v1042_v43 }
 0x2e1   : > { %v1056_v15 = vmax.f32 %v1053_v44, %v1054_v42 }
 0x2e3   : > { %v1057_v45 = vmax.f32 %v1055_v7, %v1056_v15 }
 0x2e5   : > { %v1058_v17 = vrot.slane %v1057_v45, 4 }
 0x2e7   : > { %v1059_v20 = vmax.f32 %v1057_v45, %v1058_v17 }
 0x2e9   : > { %v1060_v22 = vrot.slane %v1059_v20, 2 }
 0x2eb   : > { %v1061_v25 = vmax.f32 %v1059_v20, %v1060_v22 }
 0x2ed   : > { %v1062_v47 = vrot.slane %v1061_v25, 1 }
 0x2ef   : > { %v1063_v48 = vmax.f32 %v1061_v25, %v1062_v47 }
 0x2f1   : > { %v1064_v33 = vmax.f32 %v3098_v5, %v1063_v48 }
 0x2f3   : > { %v1065_v35 = vsub.f32 %v3098_v5, %v1064_v33  ;;  %v1071_v40 = vrot.slane %v1064_v33, %v3058_v53 }
 0x2f5   : > { %v1072_v30 = vsub.f32 %v1012_v27, %v1071_v40  ;;  %v1073_v51 = vsub.f32 %v1822_v23, %v1071_v40  ;;  %v1074_v32 = vsub.f32 %v1022_v29, %v1071_v40  ;;  %v1075_v38 = vsub.f32 %v1825_v28, %v1071_v40 }
 0x2f6   : > { %v1076_v52 = vsub.f32 %v1032_v37, %v1071_v40  ;;  %v1077_v55 = vsub.f32 %v1828_v6, %v1071_v40  ;;  %v1078_v56 = vsub.f32 %v1042_v43, %v1071_v40  ;;  %v1079_v49 = vsub.f32 %v1831_v11, %v1071_v40  ;;  %v1339_v40 = vld [vmem:[#allocation13 + $0x8] sm:$0xff] }
 0x2f7   : > { %v1080_v50 = vmul.f32 1.442695, %v1072_v30  ;;  %v1082_v2 = vmul.f32 1.442695, %v1073_v51  ;;  %v1084_v54 = vmul.f32 1.442695, %v1074_v32 }
 0x2f8   : > { %v1086_v57 = vmul.f32 1.442695, %v1075_v38  ;;  %v1088_v58 = vmul.f32 1.442695, %v1076_v52  ;;  %v1090_v59 = vmul.f32 1.442695, %v1077_v55 }
 0x2f9   : > { %2243 = vpow2.f32 %v1080_v50  ;;  %v1092_v60 = vmul.f32 1.442695, %v1078_v56  ;;  %v1094_v61 = vmul.f32 1.442695, %v1079_v49  ;;  %v1066_v28 = vmul.f32 1.442695, %v1065_v35 }
 0x2fa   : > { %2245 = vpow2.f32 %v1082_v2  ;;  %v1340_v51 = vld [vmem:[#allocation13 + $0x10] sm:$0xff]  ;;  %v1341_v32 = vld [vmem:[#allocation13 + $0x18] sm:$0xff]  ;;  %v1343_v52 = vld [vmem:[#allocation13 + $0x28] sm:$0xff] }
 0x2fb   : > { %2247 = vpow2.f32 %v1084_v54  ;;  %v2086_v38 = vpack.c.bf16 %v1341_v32, %v1340_v51  ;;  %v1344_v56 = vld [vmem:[#allocation13 + $0x30] sm:$0xff]  ;;  %v1345_v49 = vld [vmem:[#allocation13 + $0x38] sm:$0xff]  ;;  %v1346_v2 = vld [vmem:[#allocation13 + $0x40] sm:$0xff] }
 0x2fc   : > { %2249 = vpow2.f32 %v1086_v57  ;;  %v2092_v50 = vpack.c.bf16 %v1345_v49, %v1344_v56  ;;  %v1347_v54 = vld [vmem:[#allocation13 + $0x48] sm:$0xff] }
 0x2fd   : > { %2251 = vpow2.f32 %v1088_v58  ;;  %v2095_v57 = vpack.c.bf16 %v1347_v54, %v1346_v2  ;;  %v1348_v58 = vld [vmem:[#allocation13 + $0x50] sm:$0xff] }
 0x2fe   : > { %2253 = vpow2.f32 %v1090_v59  ;;  %v1349_v59 = vld [vmem:[#allocation13 + $0x58] sm:$0xff] }
 0x2ff   : > { %2255 = vpow2.f32 %v1092_v60  ;;  %v2098_v60 = vpack.c.bf16 %v1349_v59, %v1348_v58 }
 0x300   : > { %2257 = vpow2.f32 %v1094_v61  ;;  %v1350_v61 = vld [vmem:[#allocation13 + $0x60] sm:$0xff] }
 0x301   : > { %2259 = vpow2.f32 %v1066_v28 }
 0x303   : > { %v2244_v62 = vpop.eup %2243 }
 0x304   : > { %v2246_v63 = vpop.eup %2245 }
 0x305   : > { %v1096_v4 = vadd.f32 %v2246_v63, %v2244_v62  ;;  %v2248_v5 = vpop.eup %2247 }
 0x306   : > { %v2250_v9 = vpop.eup %2249 }
 0x307   : > { %v1097_v8 = vadd.f32 %v2248_v5, %v1096_v4  ;;  %v2252_v13 = vpop.eup %2251  ;;  %v1352_v4 = vld [vmem:[#allocation13 + $0x70] sm:$0xff] }
 0x308   : > { %v2254_v18 = vpop.eup %2253 }
 0x309   : > { %v1098_v10 = vadd.f32 %v2250_v9, %v1097_v8  ;;  %v2256_v21 = vpop.eup %2255 }
 0x30a   : > { %v2258_v27 = vpop.eup %2257 }
 0x30b   : > { %v1099_v14 = vadd.f32 %v2252_v13, %v1098_v10  ;;  %v2260_v42 = vpop.eup %2259 }
 0x30d   : > { %v1100_v19 = vadd.f32 %v2254_v18, %v1099_v14 }
 0x30f   : > { %v1101_v23 = vadd.f32 %v2256_v21, %v1100_v19 }
 0x311   : > { %v1102_v29 = vadd.f32 %v2258_v27, %v1101_v23 }
 0x313   : > { %v1103_v6 = vrot.slane %v1102_v29, 4 }
 0x315   : > { %v1104_v36 = vadd.f32 %v1103_v6, %v1102_v29 }
 0x317   : > { %v1105_v37 = vrot.slane %v1104_v36, 2 }
 0x319   : > { %v1106_v39 = vadd.f32 %v1105_v37, %v1104_v36 }
 0x31b   : > { %v1107_v7 = vrot.slane %v1106_v39, 1 }
 0x31d   : > { %v1108_v11 = vadd.f32 %v1107_v7, %v1106_v39 }
 0x31f   : > { %v1109_v43 = vadd.f32 %v2260_v42, %v1108_v11 }
 0x321   : > { %2261 = vrcp.f32 %v1109_v43 }
 0x32b   : > { %v2262_v44 = vpop.eup %2261 }
 0x32c   : > { %v1111_v15 = vmul.f32 %v2262_v44, %v2260_v42  ;;  %v1115_v45 = vrot.slane %v2262_v44, %v3058_v53  ;;  %v1338_v53 = vld [vmem:[#allocation13] sm:$0xff] }
 0x32d   : > { %v2083_v30 = vpack.c.bf16 %v1339_v40, %v1338_v53 }
 0x32e   : > { %1865 = vmatmul.mubr.f32.vlgmr.msra.gmra.mrb[6].mxu1 %v1111_v15  ;;  %v1116_v17 = vmul.f32 %v2244_v62, %v1115_v45  ;;  %v1117_v20 = vmul.f32 %v2246_v63, %v1115_v45  ;;  %v1118_v22 = vmul.f32 %v2248_v5, %v1115_v45  ;;  %v1119_v25 = vmul.f32 %v2250_v9, %v1115_v45  ;;  %v1351_v62 = vld [vmem:[#allocation13 + $0x68] sm:$0xff]  ;;  %v1353_v5 = vld [vmem:[#allocation13 + $0x78] sm:$0xff] }
 0x32f   : > { %v1120_v47 = vmul.f32 %v2252_v13, %v1115_v45  ;;  %v1121_v48 = vmul.f32 %v2254_v18, %v1115_v45  ;;  %v1122_v33 = vmul.f32 %v2256_v21, %v1115_v45  ;;  %v1123_v35 = vmul.f32 %v2258_v27, %v1115_v45  ;;  %1943 = vmatprep.mubr.msk.f32.mxu1 %vm2551_vm0, %v2552_v1  ;;  %v1342_v1 = vld [vmem:[#allocation13 + $0x20] sm:$0xff] }
 0x330   : > { %1899 = vmatprep.mubr.f32.mxu0 %v1116_v17  ;;  %2084 = vmatpush3.bf16.msra.mxu1 %v2083_v30  ;;  %v2089_v55 = vpack.c.bf16 %v1343_v52, %v1342_v1  ;;  %v2101_v63 = vpack.c.bf16 %v1351_v62, %v1350_v61  ;;  %v2104_v8 = vpack.c.bf16 %v1353_v5, %v1352_v4 }
 0x331   : > { %1900 = vmatmul.mubr.f32.vlgmr.msra.gmra.mrb[26].mxu0 %v1117_v20  ;;  %2085 = vmatprep.subr.bf16.mxu1 %v2550_v0 }
 0x332   : > { %1902 = vmatprep.mubr.f32.mxu0 %v1118_v22 }
 0x334   : > { %2087 = vmatpush3.bf16.msra.mxu1 %v2086_v38 }
 0x335   : > { %1903 = vmatmul.mubr.f32.gmra.mrb[28].mxu0 %v1119_v25  ;;  %2088 = vmatprep.subr.bf16.mxu1 %v2550_v0 }
 0x336   : > { %1905 = vmatprep.mubr.f32.mxu0 %v1120_v47 }
 0x338   : > { %2090 = vmatpush3.bf16.msra.mxu1 %v2089_v55 }
 0x339   : > { %1906 = vmatmul.mubr.f32.gmra.mrb[30].mxu0 %v1121_v48  ;;  %2091 = vmatprep.subr.bf16.mxu1 %v2550_v0 }
 0x33a   : > { %1908 = vmatprep.mubr.f32.mxu0 %v1122_v33 }
 0x33c   : > { %2093 = vmatpush3.bf16.msra.mxu1 %v2092_v50 }
 0x33d   : > { %1909 = vmatmul.mubr.f32.gmra.mrb[32].mxu0 %v1123_v35  ;;  %2094 = vmatprep.subr.bf16.mxu1 %v2550_v0 }
 0x340   : > { %2096 = vmatpush3.bf16.msra.mxu1 %v2095_v57 }
 0x341   : > { %2097 = vmatprep.subr.bf16.mxu1 %v2550_v0 }
 0x344   : > { %2099 = vmatpush3.bf16.msra.mxu1 %v2098_v60 }
 0x345   : > { %2100 = vmatprep.subr.bf16.mxu1 %v2550_v0 }
 0x348   : > { %2102 = vmatpush3.bf16.msra.mxu1 %v2101_v63 }
 0x349   : > { %2103 = vmatprep.subr.bf16.mxu1 %v2550_v0 }
 0x34c   : > { %2105 = vmatpush3.bf16.msra.mxu1 %v2104_v8 }
 0x401   : > { %v1206_v9 = vpop.f32.mrb[6].mxu1 }
 0x402   : > { %v1315_v10 = vmul.f32 %v1206_v9, %v3065_v3  ;;  %v1866_v13 = vpop.f32.mrb[7].mxu1 }
 0x404   : > { %v1901_v14 = vpop.f32.mrb[26].mxu0 }
 0x405   : > { %v1317_v18 = vmul.f32 %v1901_v14, %v3074_v24  ;;  %v1276_v19 = vpop.f32.mrb[27].mxu0 }
 0x406   : > { %v1316_v21 = vmul.f32 %v1276_v19, %v3071_v16 }
 0x408   : > { %v1324_v23 = vadd.f32 %v1317_v18, %v1316_v21  ;;  %v1904_v27 = vpop.f32.mrb[28].mxu0 }
 0x409   : > { %v1319_v28 = vmul.f32 %v1904_v27, %v3080_v41  ;;  %v1286_v29 = vpop.f32.mrb[29].mxu0 }
 0x40a   : > { %v1318_v6 = vmul.f32 %v1286_v29, %v3077_v34 }
 0x40c   : > { %v1325_v36 = vadd.f32 %v1324_v23, %v1318_v6  ;;  %v1907_v0 = vpop.f32.mrb[30].mxu0 }
 0x40d   : > { %v1321_v37 = vmul.f32 %v1907_v0, %v3086_v46  ;;  %v1296_v39 = vpop.f32.mrb[31].mxu0 }
 0x40e   : > { %v1320_v3 = vmul.f32 %v1296_v39, %v3083_v12  ;;  %v1326_v7 = vadd.f32 %v1325_v36, %v1319_v28 }
 0x410   : > { %v1327_v11 = vadd.f32 %v1326_v7, %v1320_v3  ;;  %v1910_v24 = vpop.f32.mrb[32].mxu0 }
 0x411   : > { %v1323_v16 = vmul.f32 %v1910_v24, %v3092_v31  ;;  %v1306_v42 = vpop.f32.mrb[33].mxu0  ;;  %v1354_v31 = vld [vmem:[%s3218_s14] sm:$0x1] }
 0x412   : > { %v1322_v41 = vmul.f32 %v1306_v42, %v3089_v26  ;;  %v1328_v43 = vadd.f32 %v1327_v11, %v1321_v37 }
 0x414   : > { %v1329_v44 = vadd.f32 %v1328_v43, %v1322_v41 }
 0x416   : > { %v1330_v34 = vadd.f32 %v1329_v44, %v1323_v16 }
 0x418   : > { %v1331_v15 = vrot.slane %v1330_v34, 4 }
 0x41a   : > { %v1332_v45 = vadd.f32 %v1331_v15, %v1330_v34 }
 0x41c   : > { %v1333_v17 = vrot.slane %v1332_v45, 2 }
 0x41e   : > { %v1334_v46 = vadd.f32 %v1333_v17, %v1332_v45 }
 0x420   : > { %v1335_v20 = vrot.slane %v1334_v46, 1 }
 0x422   : > { %v1336_v12 = vadd.f32 %v1335_v20, %v1334_v46 }
 0x424   : > { %v1337_v22 = vadd.f32 %v1336_v12, %v1315_v10 }
 0x426   : > { %1944 = vmatmul.mubr.f32.vlgmr.msra.gmra.mrb[8].mxu1 %v1337_v22 }
 0x4f9   : > { %v1421_v26 = vpop.f32.mrb[8].mxu1 }
 0x4fa   : > { %v1422_v25 = vadd.f32 %v1421_v26, %v1354_v31  ;;  %v1945_v47 = vpop.f32.mrb[9].mxu1 }
 0x4fc   : > { %1425 = vst [vmem:[%s490_s15] sm:$0x1] %v1422_v25 }
 0x4fd   : > { %2474 = shalt.err (!%p2471_p8)
}
 0x4fe   : > { %s2475_s13 = scalar_lea.hbm %s3134_s4, 16  ;;  %s2479_s27 = scalar_lea.hbm %s3219_s12, 32 }
 0x4ff   : > { %p2476_p4 = scmp.ne.s32.totalorder %s3134_s4, %s2475_s13  ;;  %p2480_p3 = scmp.lt.u32.totalorder %s3134_s4, %s3219_s12 }
 0x500   : > { %p2481_p5 = scmp.lt.u32.totalorder %s2479_s27, %s2475_s13  ;;  %p2483_p6 = scmp.lt.u32.totalorder %s2475_s13, %s3134_s4 }
 0x501   : > { %p2477_p10 = pnand %p2476_p4, %p3220_p9 }
 0x502   : > { %p2482_p7 = por %p2481_p5, %p2480_p3 }
 0x503   : > { %p2478_p11 = pneg %p2477_p10 }
 0x504   : > { %p2484_p12 = por %p2483_p6, %p2482_p7 }
 0x506   : > { %p2485_p1 = pnand %p2484_p12, %p2478_p11 }
 0x508   : > { %2488 = shalt.err (!%p2485_p1)
}
 0x509   : > { %2132 = dma.vmem_to_hbm [thread:$0]  (%p3220_p9), %s3136_s28, 16, %s3134_s4, %s1427_s11  }
 0x50a PF: > { %s1451_s30 = sand.u32 1, %s2527_s17   ;;  %p3221_p13 = scmp.ne.s32.totalorder %s3207_s25, 0 }
 0x50b   : > { %p3222_p0 = scmp.ge.s32.totalorder %s2539_s20, 2  ;;  %s1452_s29 = scalar_lea.sflag [#allocation4], %s1451_s30 }
 0x50d   : > { %p2158_p2 = pnand %p3222_p0, %p3221_p13 }
 0x50f   : > { %2522 = dma.done.wait (!%p2158_p2), %s1452_s29, 16  }
 0x510   : > { %2524 = vsyncadd (!%p2158_p2), %s1452_s29, 4294967280  ;;  %p27_p8 = scmp.ge.s32.totalorder %s2809_s16, 4   ;;  %s3223_s17 = smov %s2531_s18 }
 0x511   : > { %s3224_s18 = smov %s2535_s19  ;;  %s3225_s19 = smov %s2820_s10 }
 0x512   : > { %s3226_s20 = smov %s2809_s16  ;;  %29 = sbr.rel (!%p27_p8) target bundleno = 13 (0xd), region = 133 }
 0x519   :  { %1456 = vsyncpa [#allocation3], 1 }
 0x51a   :  { %1458 = vsyncpa [#allocation3 + $0x1], 1 }
 0x51b   :  { %1459 = vsyncpa [#allocation6], 1 }
 0x51c   :  { %1460 = vsyncpa [#allocation9], 1 }
 0x51d   :  { %1461 = vsyncpa [#allocation12], 1 }
 0x51e   :  { %1462 = vsyncpa [#allocation4], 1 }
 0x51f   :  { %1464 = vsyncpa [#allocation4 + $0x1], 1 }

</bundles_post_ra>
